<compile_context>
chip_gen: v7x
topology: tpu7x:2x2x1
jax: 0.10.0
libtpu: 0.0.40
codegen_flags: <defaults>
</compile_context>

<pallas_src>
import jax
import jax.numpy as jnp
from jax import lax
from jax.experimental import pallas as pl
from jax.experimental.pallas import tpu as pltpu


# ----------------------------------------------------------------------------
# Single fused kernel: audio SubNet + video SubNet + text LSTM + low-rank fusion
# ----------------------------------------------------------------------------
def _lmf_fused_kernel(
        # data
        audio_x_ref, video_x_ref, text_x_ref,
        # audio subnet (BatchNorm folded into the first linear)
        aw1_ref, ab1_ref, aw2_ref, ab2_ref, aw3_ref, ab3_ref,
        # video subnet (BatchNorm folded into the first linear)
        vw1_ref, vb1_ref, vw2_ref, vb2_ref, vw3_ref, vb3_ref,
        # text LSTM (input/hidden weights pre-transposed, biases combined)
        wih_ref, whh_ref, lb_ref,
        # fusion (ones-column and fusion_weights folded into the packed factors;
        # text output Linear folded into the text factor)
        afw_ref, afb_ref, vfw_ref, vfb_ref, tfw_ref, tfb_ref, fb_ref,
        # output
        out_ref):
    f32 = jnp.float32

    def mlp3(x, w1, b1, w2, b2, w3, b3):
        # Dropout is identity at inference time.
        y = jnp.maximum(jnp.dot(x, w1, preferred_element_type=f32) + b1, 0.0)
        y = jnp.maximum(jnp.dot(y, w2, preferred_element_type=f32) + b2, 0.0)
        y = jnp.maximum(jnp.dot(y, w3, preferred_element_type=f32) + b3, 0.0)
        return y

    # --- audio / video SubNets -------------------------------------------------
    audio_h = mlp3(audio_x_ref[...], aw1_ref[...], ab1_ref[...],
                   aw2_ref[...], ab2_ref[...], aw3_ref[...], ab3_ref[...])
    video_h = mlp3(video_x_ref[...], vw1_ref[...], vb1_ref[...],
                   vw2_ref[...], vb2_ref[...], vw3_ref[...], vb3_ref[...])

    # --- text LSTM -------------------------------------------------------------
    B, T, D = text_x_ref.shape
    H = whh_ref.shape[0]
    # Hoisted input projection: one (B*T, D) x (D, 4H) matmul replaces T tiny
    # matmuls inside the latency-bound recurrence.
    xg = jnp.dot(text_x_ref[...].reshape(B * T, D), wih_ref[...],
                 preferred_element_type=f32) + lb_ref[...]
    xg = xg.reshape(B, T, 4 * H)

    whh_t = whh_ref[...]
    h = jnp.zeros((B, H), f32)
    c = jnp.zeros((B, H), f32)
    # T is a small static constant -> static unroll; every slice below is static.
    for t in range(T):
        gates = xg[:, t, :] + jnp.dot(h, whh_t, preferred_element_type=f32)
        i_g = jax.nn.sigmoid(gates[:, 0 * H:1 * H])   # PyTorch gate order i,f,g,o
        f_g = jax.nn.sigmoid(gates[:, 1 * H:2 * H])
        g_g = jnp.tanh(gates[:, 2 * H:3 * H])
        o_g = jax.nn.sigmoid(gates[:, 3 * H:4 * H])
        c = f_g * c + i_g * g_g
        h = o_g * jnp.tanh(c)
    # Dropout on h is identity at inference; the text output Linear is folded
    # into tfw/tfb below.

    # --- low-rank trimodal fusion ----------------------------------------------
    # Packed factors: (modality_dim, rank*output_dim) weight + (1, rank*output_dim)
    # bias (the original ones-column); fusion_weights already folded into the
    # audio factor.  One matmul per modality instead of `rank` tiny ones.
    fa = jnp.dot(audio_h, afw_ref[...], preferred_element_type=f32) + afb_ref[...]
    fv = jnp.dot(video_h, vfw_ref[...], preferred_element_type=f32) + vfb_ref[...]
    ft = jnp.dot(h,       tfw_ref[...], preferred_element_type=f32) + tfb_ref[...]
    z = fa * fv * ft                                  # (B, rank*output_dim)

    O = out_ref.shape[1]
    R = z.shape[1] // O
    acc = z[:, 0:O]
    for r in range(1, R):                             # rank is static & tiny
        acc = acc + z[:, r * O:(r + 1) * O]
    out_ref[...] = acc + fb_ref[...]


def lmf_forward(packed, audio_x, video_x, text_x):
    """Fused LMF forward.  `packed` is the tuple produced by pack_params()."""
    B = audio_x.shape[0]
    output_dim = packed[-1].shape[1]                  # fusion_bias: (1, output_dim)
    args = (audio_x, video_x, text_x) + tuple(packed)
    return pl.pallas_call(
        _lmf_fused_kernel,
        out_shape=jax.ShapeDtypeStruct((B, output_dim), jnp.float32),
        in_specs=[pl.BlockSpec(memory_space=pltpu.MemorySpace.VMEM)] * len(args),
        out_specs=pl.BlockSpec(memory_space=pltpu.MemorySpace.VMEM),
    )(*args)
    # TODO(synk): if batch grows large, add a batch grid axis with
    # dimension_semantics=("parallel",) so both TensorCores (v7x) are used,
    # and consider bf16 MXU operands with f32 accumulation.


# ----------------------------------------------------------------------------
# Parameter construction (PyTorch-layout params) + one-time packing for the kernel
# ----------------------------------------------------------------------------
def _normal(key, shape, scale):
    return (scale * jax.random.normal(key, shape, dtype=jnp.float32)).astype(jnp.float32)


def init_subnet(key, in_size, hidden, out_size):
    ks = jax.random.split(key, 6)
    return dict(
        gamma=jnp.ones((1, in_size), jnp.float32),
        beta=jnp.zeros((1, in_size), jnp.float32),
        mean=jnp.zeros((1, in_size), jnp.float32),
        var=jnp.ones((1, in_size), jnp.float32),
        w1=_normal(ks[0], (hidden, in_size), in_size ** -0.5),
        b1=_normal(ks[1], (1, hidden), 0.01),
        w2=_normal(ks[2], (hidden, hidden), hidden ** -0.5),
        b2=_normal(ks[3], (1, hidden), 0.01),
        w3=_normal(ks[4], (out_size, hidden), hidden ** -0.5),
        b3=_normal(ks[5], (1, out_size), 0.01),
    )


def init_text_lstm(key, in_size, hidden, out_size):
    ks = jax.random.split(key, 5)
    return dict(
        wih=_normal(ks[0], (4 * hidden, in_size), in_size ** -0.5),  # gate order i,f,g,o
        whh=_normal(ks[1], (4 * hidden, hidden), hidden ** -0.5),
        b=_normal(ks[2], (1, 4 * hidden), 0.01),                     # b_ih + b_hh combined
        wo=_normal(ks[3], (out_size, hidden), hidden ** -0.5),
        bo=_normal(ks[4], (1, out_size), 0.01),
    )


def init_fusion(key, a_out, v_out, t_out, rank, out_dim):
    ks = jax.random.split(key, 4)

    def xavier(k, shape):
        fan_in, fan_out = shape[-2], shape[-1]
        std = (2.0 / (fan_in + fan_out)) ** 0.5
        return _normal(k, shape, std)

    return dict(
        audio_factor=xavier(ks[0], (rank, a_out + 1, out_dim)),
        video_factor=xavier(ks[1], (rank, v_out + 1, out_dim)),
        text_factor=xavier(ks[2], (rank, t_out + 1, out_dim)),
        fusion_weights=xavier(ks[3], (1, rank)),
        fusion_bias=jnp.zeros((1, out_dim), jnp.float32),
    )


def init_lmf(key, cfg):
    ka, kv, kt, kf = jax.random.split(key, 4)
    return dict(
        audio_subnet=init_subnet(ka, cfg["audio_in"], cfg["audio_hidden"], cfg["audio_out"]),
        video_subnet=init_subnet(kv, cfg["video_in"], cfg["video_hidden"], cfg["video_out"]),
        text_subnet=init_text_lstm(kt, cfg["text_in"], cfg["text_hidden"], cfg["text_out"]),
        fusion=init_fusion(kf, cfg["audio_out"], cfg["video_out"], cfg["text_out"],
                           cfg["rank"], cfg["output_dim"]),
    )


def pack_params(params):
    """One-time repack of PyTorch-layout params into kernel-ready tensors:
    pre-transposed weights, BatchNorm folded into linear_1, ones-column turned
    into bias rows, fusion_weights folded into the audio factor, text output
    Linear folded into the text fusion factor."""

    def pack_subnet(p):
        scale = p["gamma"] * lax.rsqrt(p["var"] + 1e-5)      # (1, in)
        shift = p["beta"] - p["mean"] * scale                # (1, in)
        w1t = p["w1"].T * scale.T                            # (in, hidden)
        b1 = p["b1"] + shift @ p["w1"].T                     # (1, hidden)
        return (w1t, b1, p["w2"].T, p["b2"], p["w3"].T, p["b3"])

    def split_factor(f, scale=None):
        rank, ip1, out = f.shape
        if scale is not None:
            f = f * scale[:, None, None]
        w = jnp.transpose(f[:, 1:, :], (1, 0, 2)).reshape(ip1 - 1, rank * out)
        b = f[:, 0, :].reshape(1, rank * out)                # the ones-column rows
        return w, b

    fus = params["fusion"]
    fw = fus["fusion_weights"][0]                            # (rank,)
    afw, afb = split_factor(fus["audio_factor"], fw)         # fw folded here only
    vfw, vfb = split_factor(fus["video_factor"])
    tfw, tfb = split_factor(fus["text_factor"])

    txt = params["text_subnet"]
    # Fold the text output Linear into the text fusion factor (no nonlinearity
    # in between):  (h @ wo.T + bo) @ tfw + tfb  ==  h @ (wo.T @ tfw) + (bo @ tfw + tfb)
    wot = txt["wo"].T @ tfw                                  # (H, rank*output_dim)
    bot = txt["bo"] @ tfw + tfb                              # (1, rank*output_dim)

    return (*pack_subnet(params["audio_subnet"]),
            *pack_subnet(params["video_subnet"]),
            txt["wih"].T, txt["whh"].T, txt["b"],
            afw, afb, vfw, vfb, wot, bot, fus["fusion_bias"])
    # TODO(synk): TT/TensorizedLinear, AdaptiveRankLSTM and the TT_ATTN encoder
    # branch depend on classes not provided; only the dense paths are implemented.


# ----------------------------------------------------------------------------
# Pure-JAX reference (original, unpacked math) for a numerical sanity check
# ----------------------------------------------------------------------------
def _ref_forward(params, audio_x, video_x, text_x):
    def subnet(x, p):
        normed = (x - p["mean"]) * lax.rsqrt(p["var"] + 1e-5) * p["gamma"] + p["beta"]
        y = jnp.maximum(normed @ p["w1"].T + p["b1"], 0.0)
        y = jnp.maximum(y @ p["w2"].T + p["b2"], 0.0)
        y = jnp.maximum(y @ p["w3"].T + p["b3"], 0.0)
        return y

    def text_net(x, p):
        B, T, D = x.shape
        H = p["whh"].shape[1]
        h = jnp.zeros((B, H), jnp.float32)
        c = jnp.zeros((B, H), jnp.float32)
        for t in range(T):
            g = x[:, t, :] @ p["wih"].T + h @ p["whh"].T + p["b"]
            i, f, gg, o = (jax.nn.sigmoid(g[:, :H]), jax.nn.sigmoid(g[:, H:2 * H]),
                           jnp.tanh(g[:, 2 * H:3 * H]), jax.nn.sigmoid(g[:, 3 * H:]))
            c = f * c + i * gg
            h = o * jnp.tanh(c)
        return h @ p["wo"].T + p["bo"]

    a_h = subnet(audio_x, params["audio_subnet"])
    v_h = subnet(video_x, params["video_subnet"])
    t_h = text_net(text_x, params["text_subnet"])
    B = audio_x.shape[0]
    ones = jnp.ones((B, 1), jnp.float32)
    _a = jnp.concatenate([ones, a_h], axis=1)
    _v = jnp.concatenate([ones, v_h], axis=1)
    _t = jnp.concatenate([ones, t_h], axis=1)
    fp = params["fusion"]
    fa = jnp.einsum("bi,rio->rbo", _a, fp["audio_factor"])
    fv = jnp.einsum("bi,rio->rbo", _v, fp["video_factor"])
    ft = jnp.einsum("bi,rio->rbo", _t, fp["text_factor"])
    zy = (fa * fv * ft).transpose(1, 0, 2)                    # (B, rank, out)
    out = jnp.einsum("r,bro->bo", fp["fusion_weights"][0], zy) + fp["fusion_bias"]
    return out


# ----------------------------------------------------------------------------
if __name__ == "__main__":
    cfg = dict(
        batch=2,
        audio_in=16, video_in=16, text_in=16, text_seq=8,
        audio_hidden=32, video_hidden=32, text_hidden=32,
        audio_out=8, video_out=8, text_out=8,
        output_dim=4, rank=4,
    )

    key = jax.random.PRNGKey(0)
    k_params, k_a, k_v, k_t = jax.random.split(key, 4)
    params = init_lmf(k_params, cfg)
    packed = jax.tree_util.tree_map(jax.block_until_ready, pack_params(params))

    audio_x = jax.random.normal(k_a, (cfg["batch"], cfg["audio_in"]), dtype=jnp.float32)
    video_x = jax.random.normal(k_v, (cfg["batch"], cfg["video_in"]), dtype=jnp.float32)
    text_x = jax.random.normal(k_t, (cfg["batch"], cfg["text_seq"], cfg["text_in"]),
                               dtype=jnp.float32)

    out = lmf_forward(packed, audio_x, video_x, text_x)
    out = jax.block_until_ready(out)

    ref = jax.block_until_ready(_ref_forward(params, audio_x, video_x, text_x))
    assert out.shape == (cfg["batch"], cfg["output_dim"]), out.shape
    assert jnp.allclose(out, ref, rtol=1e-4, atol=1e-4), (out, ref)

    print("KERNEL_OK")
</pallas_src>

<mosaic_0001>
module attributes {stable_mosaic.version = 11 : i64} {
  func.func @_lmf_fused_kernel(%arg0: memref<2x16xf32, #tpu.memory_space<vmem>>, %arg1: memref<2x16xf32, #tpu.memory_space<vmem>>, %arg2: memref<2x8x16xf32, #tpu.memory_space<vmem>>, %arg3: memref<16x32xf32, #tpu.memory_space<vmem>>, %arg4: memref<1x32xf32, #tpu.memory_space<vmem>>, %arg5: memref<32x32xf32, #tpu.memory_space<vmem>>, %arg6: memref<1x32xf32, #tpu.memory_space<vmem>>, %arg7: memref<32x8xf32, #tpu.memory_space<vmem>>, %arg8: memref<1x8xf32, #tpu.memory_space<vmem>>, %arg9: memref<16x32xf32, #tpu.memory_space<vmem>>, %arg10: memref<1x32xf32, #tpu.memory_space<vmem>>, %arg11: memref<32x32xf32, #tpu.memory_space<vmem>>, %arg12: memref<1x32xf32, #tpu.memory_space<vmem>>, %arg13: memref<32x8xf32, #tpu.memory_space<vmem>>, %arg14: memref<1x8xf32, #tpu.memory_space<vmem>>, %arg15: memref<16x128xf32, #tpu.memory_space<vmem>>, %arg16: memref<32x128xf32, #tpu.memory_space<vmem>>, %arg17: memref<1x128xf32, #tpu.memory_space<vmem>>, %arg18: memref<8x16xf32, #tpu.memory_space<vmem>>, %arg19: memref<1x16xf32, #tpu.memory_space<vmem>>, %arg20: memref<8x16xf32, #tpu.memory_space<vmem>>, %arg21: memref<1x16xf32, #tpu.memory_space<vmem>>, %arg22: memref<32x16xf32, #tpu.memory_space<vmem>>, %arg23: memref<1x16xf32, #tpu.memory_space<vmem>>, %arg24: memref<1x4xf32, #tpu.memory_space<vmem>>, %arg25: memref<2x4xf32, #tpu.memory_space<vmem>>) attributes {dimension_semantics = [], scalar_prefetch = 0 : i64, scratch_operands = 0 : i64, tpu.core_type = #tpu.core_type<tc>} {
    %c0 = arith.constant 0 : index
    %c0_0 = arith.constant 0 : index
    %0 = vector.load %arg0[%c0, %c0_0] : memref<2x16xf32, #tpu.memory_space<vmem>>, vector<2x16xf32>
    %c0_1 = arith.constant 0 : index
    %c0_2 = arith.constant 0 : index
    %1 = vector.load %arg3[%c0_1, %c0_2] : memref<16x32xf32, #tpu.memory_space<vmem>>, vector<16x32xf32>
    %c0_3 = arith.constant 0 : index
    %c0_4 = arith.constant 0 : index
    %2 = vector.load %arg4[%c0_3, %c0_4] : memref<1x32xf32, #tpu.memory_space<vmem>>, vector<1x32xf32>
    %c0_5 = arith.constant 0 : index
    %c0_6 = arith.constant 0 : index
    %3 = vector.load %arg5[%c0_5, %c0_6] : memref<32x32xf32, #tpu.memory_space<vmem>>, vector<32x32xf32>
    %c0_7 = arith.constant 0 : index
    %c0_8 = arith.constant 0 : index
    %4 = vector.load %arg6[%c0_7, %c0_8] : memref<1x32xf32, #tpu.memory_space<vmem>>, vector<1x32xf32>
    %c0_9 = arith.constant 0 : index
    %c0_10 = arith.constant 0 : index
    %5 = vector.load %arg7[%c0_9, %c0_10] : memref<32x8xf32, #tpu.memory_space<vmem>>, vector<32x8xf32>
    %c0_11 = arith.constant 0 : index
    %c0_12 = arith.constant 0 : index
    %6 = vector.load %arg8[%c0_11, %c0_12] : memref<1x8xf32, #tpu.memory_space<vmem>>, vector<1x8xf32>
    %cst = arith.constant dense<0.000000e+00> : vector<2x32xf32>
    %7 = tpu.matmul %0, %1, %cst {dimension_numbers = #tpu.dot_dimension_numbers<[1], [0], [0], [1], [0, 0, 1, 1], [], []>} : vector<2x16xf32>, vector<16x32xf32>, vector<2x32xf32> -> vector<2x32xf32>
    %8 = vector.broadcast %2 : vector<1x32xf32> to vector<2x32xf32>
    %9 = arith.addf %7, %8 : vector<2x32xf32>
    %cst_13 = arith.constant 0.000000e+00 : f32
    %10 = vector.broadcast %cst_13 : f32 to vector<2x32xf32>
    %11 = arith.maximumf %9, %10 : vector<2x32xf32>
    %cst_14 = arith.constant dense<0.000000e+00> : vector<2x32xf32>
    %12 = tpu.matmul %11, %3, %cst_14 {dimension_numbers = #tpu.dot_dimension_numbers<[1], [0], [0], [1], [0, 0, 1, 1], [], []>} : vector<2x32xf32>, vector<32x32xf32>, vector<2x32xf32> -> vector<2x32xf32>
    %13 = vector.broadcast %4 : vector<1x32xf32> to vector<2x32xf32>
    %14 = arith.addf %12, %13 : vector<2x32xf32>
    %cst_15 = arith.constant 0.000000e+00 : f32
    %15 = vector.broadcast %cst_15 : f32 to vector<2x32xf32>
    %16 = arith.maximumf %14, %15 : vector<2x32xf32>
    %cst_16 = arith.constant dense<0.000000e+00> : vector<2x8xf32>
    %17 = tpu.matmul %16, %5, %cst_16 {dimension_numbers = #tpu.dot_dimension_numbers<[1], [0], [0], [1], [0, 0, 1, 1], [], []>} : vector<2x32xf32>, vector<32x8xf32>, vector<2x8xf32> -> vector<2x8xf32>
    %18 = vector.broadcast %6 : vector<1x8xf32> to vector<2x8xf32>
    %19 = arith.addf %17, %18 : vector<2x8xf32>
    %cst_17 = arith.constant 0.000000e+00 : f32
    %20 = vector.broadcast %cst_17 : f32 to vector<2x8xf32>
    %21 = arith.maximumf %19, %20 : vector<2x8xf32>
    %c0_18 = arith.constant 0 : index
    %c0_19 = arith.constant 0 : index
    %22 = vector.load %arg1[%c0_18, %c0_19] : memref<2x16xf32, #tpu.memory_space<vmem>>, vector<2x16xf32>
    %c0_20 = arith.constant 0 : index
    %c0_21 = arith.constant 0 : index
    %23 = vector.load %arg9[%c0_20, %c0_21] : memref<16x32xf32, #tpu.memory_space<vmem>>, vector<16x32xf32>
    %c0_22 = arith.constant 0 : index
    %c0_23 = arith.constant 0 : index
    %24 = vector.load %arg10[%c0_22, %c0_23] : memref<1x32xf32, #tpu.memory_space<vmem>>, vector<1x32xf32>
    %c0_24 = arith.constant 0 : index
    %c0_25 = arith.constant 0 : index
    %25 = vector.load %arg11[%c0_24, %c0_25] : memref<32x32xf32, #tpu.memory_space<vmem>>, vector<32x32xf32>
    %c0_26 = arith.constant 0 : index
    %c0_27 = arith.constant 0 : index
    %26 = vector.load %arg12[%c0_26, %c0_27] : memref<1x32xf32, #tpu.memory_space<vmem>>, vector<1x32xf32>
    %c0_28 = arith.constant 0 : index
    %c0_29 = arith.constant 0 : index
    %27 = vector.load %arg13[%c0_28, %c0_29] : memref<32x8xf32, #tpu.memory_space<vmem>>, vector<32x8xf32>
    %c0_30 = arith.constant 0 : index
    %c0_31 = arith.constant 0 : index
    %28 = vector.load %arg14[%c0_30, %c0_31] : memref<1x8xf32, #tpu.memory_space<vmem>>, vector<1x8xf32>
    %cst_32 = arith.constant dense<0.000000e+00> : vector<2x32xf32>
    %29 = tpu.matmul %22, %23, %cst_32 {dimension_numbers = #tpu.dot_dimension_numbers<[1], [0], [0], [1], [0, 0, 1, 1], [], []>} : vector<2x16xf32>, vector<16x32xf32>, vector<2x32xf32> -> vector<2x32xf32>
    %30 = vector.broadcast %24 : vector<1x32xf32> to vector<2x32xf32>
    %31 = arith.addf %29, %30 : vector<2x32xf32>
    %cst_33 = arith.constant 0.000000e+00 : f32
    %32 = vector.broadcast %cst_33 : f32 to vector<2x32xf32>
    %33 = arith.maximumf %31, %32 : vector<2x32xf32>
    %cst_34 = arith.constant dense<0.000000e+00> : vector<2x32xf32>
    %34 = tpu.matmul %33, %25, %cst_34 {dimension_numbers = #tpu.dot_dimension_numbers<[1], [0], [0], [1], [0, 0, 1, 1], [], []>} : vector<2x32xf32>, vector<32x32xf32>, vector<2x32xf32> -> vector<2x32xf32>
    %35 = vector.broadcast %26 : vector<1x32xf32> to vector<2x32xf32>
    %36 = arith.addf %34, %35 : vector<2x32xf32>
    %cst_35 = arith.constant 0.000000e+00 : f32
    %37 = vector.broadcast %cst_35 : f32 to vector<2x32xf32>
    %38 = arith.maximumf %36, %37 : vector<2x32xf32>
    %cst_36 = arith.constant dense<0.000000e+00> : vector<2x8xf32>
    %39 = tpu.matmul %38, %27, %cst_36 {dimension_numbers = #tpu.dot_dimension_numbers<[1], [0], [0], [1], [0, 0, 1, 1], [], []>} : vector<2x32xf32>, vector<32x8xf32>, vector<2x8xf32> -> vector<2x8xf32>
    %40 = vector.broadcast %28 : vector<1x8xf32> to vector<2x8xf32>
    %41 = arith.addf %39, %40 : vector<2x8xf32>
    %cst_37 = arith.constant 0.000000e+00 : f32
    %42 = vector.broadcast %cst_37 : f32 to vector<2x8xf32>
    %43 = arith.maximumf %41, %42 : vector<2x8xf32>
    %c0_38 = arith.constant 0 : index
    %c0_39 = arith.constant 0 : index
    %c0_40 = arith.constant 0 : index
    %44 = vector.load %arg2[%c0_38, %c0_39, %c0_40] : memref<2x8x16xf32, #tpu.memory_space<vmem>>, vector<2x8x16xf32>
    %45 = vector.shape_cast %44 : vector<2x8x16xf32> to vector<16x16xf32>
    %c0_41 = arith.constant 0 : index
    %c0_42 = arith.constant 0 : index
    %46 = vector.load %arg15[%c0_41, %c0_42] : memref<16x128xf32, #tpu.memory_space<vmem>>, vector<16x128xf32>
    %cst_43 = arith.constant dense<0.000000e+00> : vector<16x128xf32>
    %47 = tpu.matmul %45, %46, %cst_43 {dimension_numbers = #tpu.dot_dimension_numbers<[1], [0], [0], [1], [0, 0, 1, 1], [], []>} : vector<16x16xf32>, vector<16x128xf32>, vector<16x128xf32> -> vector<16x128xf32>
    %c0_44 = arith.constant 0 : index
    %c0_45 = arith.constant 0 : index
    %48 = vector.load %arg17[%c0_44, %c0_45] : memref<1x128xf32, #tpu.memory_space<vmem>>, vector<1x128xf32>
    %49 = vector.broadcast %48 : vector<1x128xf32> to vector<16x128xf32>
    %50 = arith.addf %47, %49 : vector<16x128xf32>
    %51 = vector.shape_cast %50 : vector<16x128xf32> to vector<2x8x128xf32>
    %c0_46 = arith.constant 0 : index
    %c0_47 = arith.constant 0 : index
    %52 = vector.load %arg16[%c0_46, %c0_47] : memref<32x128xf32, #tpu.memory_space<vmem>>, vector<32x128xf32>
    %cst_48 = arith.constant 0.000000e+00 : f32
    %53 = vector.broadcast %cst_48 : f32 to vector<2x32xf32>
    %cst_49 = arith.constant 0.000000e+00 : f32
    %54 = vector.broadcast %cst_49 : f32 to vector<2x32xf32>
    %55 = vector.extract_strided_slice %51 {offsets = [0, 0, 0], sizes = [2, 1, 128], strides = [1, 1, 1]} : vector<2x8x128xf32> to vector<2x1x128xf32>
    %56 = vector.shape_cast %55 : vector<2x1x128xf32> to vector<2x128xf32>
    %cst_50 = arith.constant dense<0.000000e+00> : vector<2x128xf32>
    %57 = tpu.matmul %53, %52, %cst_50 {dimension_numbers = #tpu.dot_dimension_numbers<[1], [0], [0], [1], [0, 0, 1, 1], [], []>} : vector<2x32xf32>, vector<32x128xf32>, vector<2x128xf32> -> vector<2x128xf32>
    %58 = arith.addf %56, %57 : vector<2x128xf32>
    %59 = vector.extract_strided_slice %58 {offsets = [0, 0], sizes = [2, 32], strides = [1, 1]} : vector<2x128xf32> to vector<2x32xf32>
    %60 = arith.negf %59 : vector<2x32xf32>
    %61 = math.exp %60 : vector<2x32xf32>
    %cst_51 = arith.constant 1.000000e+00 : f32
    %62 = vector.broadcast %cst_51 : f32 to vector<2x32xf32>
    %63 = arith.addf %62, %61 : vector<2x32xf32>
    %64 = arith.divf %62, %63 : vector<2x32xf32>
    %65 = vector.extract_strided_slice %58 {offsets = [0, 32], sizes = [2, 32], strides = [1, 1]} : vector<2x128xf32> to vector<2x32xf32>
    %66 = arith.negf %65 : vector<2x32xf32>
    %67 = math.exp %66 : vector<2x32xf32>
    %cst_52 = arith.constant 1.000000e+00 : f32
    %68 = vector.broadcast %cst_52 : f32 to vector<2x32xf32>
    %69 = arith.addf %68, %67 : vector<2x32xf32>
    %70 = arith.divf %68, %69 : vector<2x32xf32>
    %71 = vector.extract_strided_slice %58 {offsets = [0, 64], sizes = [2, 32], strides = [1, 1]} : vector<2x128xf32> to vector<2x32xf32>
    %72 = math.tanh %71 : vector<2x32xf32>
    %73 = vector.extract_strided_slice %58 {offsets = [0, 96], sizes = [2, 32], strides = [1, 1]} : vector<2x128xf32> to vector<2x32xf32>
    %74 = arith.negf %73 : vector<2x32xf32>
    %75 = math.exp %74 : vector<2x32xf32>
    %cst_53 = arith.constant 1.000000e+00 : f32
    %76 = vector.broadcast %cst_53 : f32 to vector<2x32xf32>
    %77 = arith.addf %76, %75 : vector<2x32xf32>
    %78 = arith.divf %76, %77 : vector<2x32xf32>
    %79 = arith.mulf %70, %54 : vector<2x32xf32>
    %80 = arith.mulf %64, %72 : vector<2x32xf32>
    %81 = arith.addf %79, %80 : vector<2x32xf32>
    %82 = math.tanh %81 : vector<2x32xf32>
    %83 = arith.mulf %78, %82 : vector<2x32xf32>
    %84 = vector.extract_strided_slice %51 {offsets = [0, 1, 0], sizes = [2, 1, 128], strides = [1, 1, 1]} : vector<2x8x128xf32> to vector<2x1x128xf32>
    %85 = vector.shape_cast %84 : vector<2x1x128xf32> to vector<2x128xf32>
    %cst_54 = arith.constant dense<0.000000e+00> : vector<2x128xf32>
    %86 = tpu.matmul %83, %52, %cst_54 {dimension_numbers = #tpu.dot_dimension_numbers<[1], [0], [0], [1], [0, 0, 1, 1], [], []>} : vector<2x32xf32>, vector<32x128xf32>, vector<2x128xf32> -> vector<2x128xf32>
    %87 = arith.addf %85, %86 : vector<2x128xf32>
    %88 = vector.extract_strided_slice %87 {offsets = [0, 0], sizes = [2, 32], strides = [1, 1]} : vector<2x128xf32> to vector<2x32xf32>
    %89 = arith.negf %88 : vector<2x32xf32>
    %90 = math.exp %89 : vector<2x32xf32>
    %cst_55 = arith.constant 1.000000e+00 : f32
    %91 = vector.broadcast %cst_55 : f32 to vector<2x32xf32>
    %92 = arith.addf %91, %90 : vector<2x32xf32>
    %93 = arith.divf %91, %92 : vector<2x32xf32>
    %94 = vector.extract_strided_slice %87 {offsets = [0, 32], sizes = [2, 32], strides = [1, 1]} : vector<2x128xf32> to vector<2x32xf32>
    %95 = arith.negf %94 : vector<2x32xf32>
    %96 = math.exp %95 : vector<2x32xf32>
    %cst_56 = arith.constant 1.000000e+00 : f32
    %97 = vector.broadcast %cst_56 : f32 to vector<2x32xf32>
    %98 = arith.addf %97, %96 : vector<2x32xf32>
    %99 = arith.divf %97, %98 : vector<2x32xf32>
    %100 = vector.extract_strided_slice %87 {offsets = [0, 64], sizes = [2, 32], strides = [1, 1]} : vector<2x128xf32> to vector<2x32xf32>
    %101 = math.tanh %100 : vector<2x32xf32>
    %102 = vector.extract_strided_slice %87 {offsets = [0, 96], sizes = [2, 32], strides = [1, 1]} : vector<2x128xf32> to vector<2x32xf32>
    %103 = arith.negf %102 : vector<2x32xf32>
    %104 = math.exp %103 : vector<2x32xf32>
    %cst_57 = arith.constant 1.000000e+00 : f32
    %105 = vector.broadcast %cst_57 : f32 to vector<2x32xf32>
    %106 = arith.addf %105, %104 : vector<2x32xf32>
    %107 = arith.divf %105, %106 : vector<2x32xf32>
    %108 = arith.mulf %99, %81 : vector<2x32xf32>
    %109 = arith.mulf %93, %101 : vector<2x32xf32>
    %110 = arith.addf %108, %109 : vector<2x32xf32>
    %111 = math.tanh %110 : vector<2x32xf32>
    %112 = arith.mulf %107, %111 : vector<2x32xf32>
    %113 = vector.extract_strided_slice %51 {offsets = [0, 2, 0], sizes = [2, 1, 128], strides = [1, 1, 1]} : vector<2x8x128xf32> to vector<2x1x128xf32>
    %114 = vector.shape_cast %113 : vector<2x1x128xf32> to vector<2x128xf32>
    %cst_58 = arith.constant dense<0.000000e+00> : vector<2x128xf32>
    %115 = tpu.matmul %112, %52, %cst_58 {dimension_numbers = #tpu.dot_dimension_numbers<[1], [0], [0], [1], [0, 0, 1, 1], [], []>} : vector<2x32xf32>, vector<32x128xf32>, vector<2x128xf32> -> vector<2x128xf32>
    %116 = arith.addf %114, %115 : vector<2x128xf32>
    %117 = vector.extract_strided_slice %116 {offsets = [0, 0], sizes = [2, 32], strides = [1, 1]} : vector<2x128xf32> to vector<2x32xf32>
    %118 = arith.negf %117 : vector<2x32xf32>
    %119 = math.exp %118 : vector<2x32xf32>
    %cst_59 = arith.constant 1.000000e+00 : f32
    %120 = vector.broadcast %cst_59 : f32 to vector<2x32xf32>
    %121 = arith.addf %120, %119 : vector<2x32xf32>
    %122 = arith.divf %120, %121 : vector<2x32xf32>
    %123 = vector.extract_strided_slice %116 {offsets = [0, 32], sizes = [2, 32], strides = [1, 1]} : vector<2x128xf32> to vector<2x32xf32>
    %124 = arith.negf %123 : vector<2x32xf32>
    %125 = math.exp %124 : vector<2x32xf32>
    %cst_60 = arith.constant 1.000000e+00 : f32
    %126 = vector.broadcast %cst_60 : f32 to vector<2x32xf32>
    %127 = arith.addf %126, %125 : vector<2x32xf32>
    %128 = arith.divf %126, %127 : vector<2x32xf32>
    %129 = vector.extract_strided_slice %116 {offsets = [0, 64], sizes = [2, 32], strides = [1, 1]} : vector<2x128xf32> to vector<2x32xf32>
    %130 = math.tanh %129 : vector<2x32xf32>
    %131 = vector.extract_strided_slice %116 {offsets = [0, 96], sizes = [2, 32], strides = [1, 1]} : vector<2x128xf32> to vector<2x32xf32>
    %132 = arith.negf %131 : vector<2x32xf32>
    %133 = math.exp %132 : vector<2x32xf32>
    %cst_61 = arith.constant 1.000000e+00 : f32
    %134 = vector.broadcast %cst_61 : f32 to vector<2x32xf32>
    %135 = arith.addf %134, %133 : vector<2x32xf32>
    %136 = arith.divf %134, %135 : vector<2x32xf32>
    %137 = arith.mulf %128, %110 : vector<2x32xf32>
    %138 = arith.mulf %122, %130 : vector<2x32xf32>
    %139 = arith.addf %137, %138 : vector<2x32xf32>
    %140 = math.tanh %139 : vector<2x32xf32>
    %141 = arith.mulf %136, %140 : vector<2x32xf32>
    %142 = vector.extract_strided_slice %51 {offsets = [0, 3, 0], sizes = [2, 1, 128], strides = [1, 1, 1]} : vector<2x8x128xf32> to vector<2x1x128xf32>
    %143 = vector.shape_cast %142 : vector<2x1x128xf32> to vector<2x128xf32>
    %cst_62 = arith.constant dense<0.000000e+00> : vector<2x128xf32>
    %144 = tpu.matmul %141, %52, %cst_62 {dimension_numbers = #tpu.dot_dimension_numbers<[1], [0], [0], [1], [0, 0, 1, 1], [], []>} : vector<2x32xf32>, vector<32x128xf32>, vector<2x128xf32> -> vector<2x128xf32>
    %145 = arith.addf %143, %144 : vector<2x128xf32>
    %146 = vector.extract_strided_slice %145 {offsets = [0, 0], sizes = [2, 32], strides = [1, 1]} : vector<2x128xf32> to vector<2x32xf32>
    %147 = arith.negf %146 : vector<2x32xf32>
    %148 = math.exp %147 : vector<2x32xf32>
    %cst_63 = arith.constant 1.000000e+00 : f32
    %149 = vector.broadcast %cst_63 : f32 to vector<2x32xf32>
    %150 = arith.addf %149, %148 : vector<2x32xf32>
    %151 = arith.divf %149, %150 : vector<2x32xf32>
    %152 = vector.extract_strided_slice %145 {offsets = [0, 32], sizes = [2, 32], strides = [1, 1]} : vector<2x128xf32> to vector<2x32xf32>
    %153 = arith.negf %152 : vector<2x32xf32>
    %154 = math.exp %153 : vector<2x32xf32>
    %cst_64 = arith.constant 1.000000e+00 : f32
    %155 = vector.broadcast %cst_64 : f32 to vector<2x32xf32>
    %156 = arith.addf %155, %154 : vector<2x32xf32>
    %157 = arith.divf %155, %156 : vector<2x32xf32>
    %158 = vector.extract_strided_slice %145 {offsets = [0, 64], sizes = [2, 32], strides = [1, 1]} : vector<2x128xf32> to vector<2x32xf32>
    %159 = math.tanh %158 : vector<2x32xf32>
    %160 = vector.extract_strided_slice %145 {offsets = [0, 96], sizes = [2, 32], strides = [1, 1]} : vector<2x128xf32> to vector<2x32xf32>
    %161 = arith.negf %160 : vector<2x32xf32>
    %162 = math.exp %161 : vector<2x32xf32>
    %cst_65 = arith.constant 1.000000e+00 : f32
    %163 = vector.broadcast %cst_65 : f32 to vector<2x32xf32>
    %164 = arith.addf %163, %162 : vector<2x32xf32>
    %165 = arith.divf %163, %164 : vector<2x32xf32>
    %166 = arith.mulf %157, %139 : vector<2x32xf32>
    %167 = arith.mulf %151, %159 : vector<2x32xf32>
    %168 = arith.addf %166, %167 : vector<2x32xf32>
    %169 = math.tanh %168 : vector<2x32xf32>
    %170 = arith.mulf %165, %169 : vector<2x32xf32>
    %171 = vector.extract_strided_slice %51 {offsets = [0, 4, 0], sizes = [2, 1, 128], strides = [1, 1, 1]} : vector<2x8x128xf32> to vector<2x1x128xf32>
    %172 = vector.shape_cast %171 : vector<2x1x128xf32> to vector<2x128xf32>
    %cst_66 = arith.constant dense<0.000000e+00> : vector<2x128xf32>
    %173 = tpu.matmul %170, %52, %cst_66 {dimension_numbers = #tpu.dot_dimension_numbers<[1], [0], [0], [1], [0, 0, 1, 1], [], []>} : vector<2x32xf32>, vector<32x128xf32>, vector<2x128xf32> -> vector<2x128xf32>
    %174 = arith.addf %172, %173 : vector<2x128xf32>
    %175 = vector.extract_strided_slice %174 {offsets = [0, 0], sizes = [2, 32], strides = [1, 1]} : vector<2x128xf32> to vector<2x32xf32>
    %176 = arith.negf %175 : vector<2x32xf32>
    %177 = math.exp %176 : vector<2x32xf32>
    %cst_67 = arith.constant 1.000000e+00 : f32
    %178 = vector.broadcast %cst_67 : f32 to vector<2x32xf32>
    %179 = arith.addf %178, %177 : vector<2x32xf32>
    %180 = arith.divf %178, %179 : vector<2x32xf32>
    %181 = vector.extract_strided_slice %174 {offsets = [0, 32], sizes = [2, 32], strides = [1, 1]} : vector<2x128xf32> to vector<2x32xf32>
    %182 = arith.negf %181 : vector<2x32xf32>
    %183 = math.exp %182 : vector<2x32xf32>
    %cst_68 = arith.constant 1.000000e+00 : f32
    %184 = vector.broadcast %cst_68 : f32 to vector<2x32xf32>
    %185 = arith.addf %184, %183 : vector<2x32xf32>
    %186 = arith.divf %184, %185 : vector<2x32xf32>
    %187 = vector.extract_strided_slice %174 {offsets = [0, 64], sizes = [2, 32], strides = [1, 1]} : vector<2x128xf32> to vector<2x32xf32>
    %188 = math.tanh %187 : vector<2x32xf32>
    %189 = vector.extract_strided_slice %174 {offsets = [0, 96], sizes = [2, 32], strides = [1, 1]} : vector<2x128xf32> to vector<2x32xf32>
    %190 = arith.negf %189 : vector<2x32xf32>
    %191 = math.exp %190 : vector<2x32xf32>
    %cst_69 = arith.constant 1.000000e+00 : f32
    %192 = vector.broadcast %cst_69 : f32 to vector<2x32xf32>
    %193 = arith.addf %192, %191 : vector<2x32xf32>
    %194 = arith.divf %192, %193 : vector<2x32xf32>
    %195 = arith.mulf %186, %168 : vector<2x32xf32>
    %196 = arith.mulf %180, %188 : vector<2x32xf32>
    %197 = arith.addf %195, %196 : vector<2x32xf32>
    %198 = math.tanh %197 : vector<2x32xf32>
    %199 = arith.mulf %194, %198 : vector<2x32xf32>
    %200 = vector.extract_strided_slice %51 {offsets = [0, 5, 0], sizes = [2, 1, 128], strides = [1, 1, 1]} : vector<2x8x128xf32> to vector<2x1x128xf32>
    %201 = vector.shape_cast %200 : vector<2x1x128xf32> to vector<2x128xf32>
    %cst_70 = arith.constant dense<0.000000e+00> : vector<2x128xf32>
    %202 = tpu.matmul %199, %52, %cst_70 {dimension_numbers = #tpu.dot_dimension_numbers<[1], [0], [0], [1], [0, 0, 1, 1], [], []>} : vector<2x32xf32>, vector<32x128xf32>, vector<2x128xf32> -> vector<2x128xf32>
    %203 = arith.addf %201, %202 : vector<2x128xf32>
    %204 = vector.extract_strided_slice %203 {offsets = [0, 0], sizes = [2, 32], strides = [1, 1]} : vector<2x128xf32> to vector<2x32xf32>
    %205 = arith.negf %204 : vector<2x32xf32>
    %206 = math.exp %205 : vector<2x32xf32>
    %cst_71 = arith.constant 1.000000e+00 : f32
    %207 = vector.broadcast %cst_71 : f32 to vector<2x32xf32>
    %208 = arith.addf %207, %206 : vector<2x32xf32>
    %209 = arith.divf %207, %208 : vector<2x32xf32>
    %210 = vector.extract_strided_slice %203 {offsets = [0, 32], sizes = [2, 32], strides = [1, 1]} : vector<2x128xf32> to vector<2x32xf32>
    %211 = arith.negf %210 : vector<2x32xf32>
    %212 = math.exp %211 : vector<2x32xf32>
    %cst_72 = arith.constant 1.000000e+00 : f32
    %213 = vector.broadcast %cst_72 : f32 to vector<2x32xf32>
    %214 = arith.addf %213, %212 : vector<2x32xf32>
    %215 = arith.divf %213, %214 : vector<2x32xf32>
    %216 = vector.extract_strided_slice %203 {offsets = [0, 64], sizes = [2, 32], strides = [1, 1]} : vector<2x128xf32> to vector<2x32xf32>
    %217 = math.tanh %216 : vector<2x32xf32>
    %218 = vector.extract_strided_slice %203 {offsets = [0, 96], sizes = [2, 32], strides = [1, 1]} : vector<2x128xf32> to vector<2x32xf32>
    %219 = arith.negf %218 : vector<2x32xf32>
    %220 = math.exp %219 : vector<2x32xf32>
    %cst_73 = arith.constant 1.000000e+00 : f32
    %221 = vector.broadcast %cst_73 : f32 to vector<2x32xf32>
    %222 = arith.addf %221, %220 : vector<2x32xf32>
    %223 = arith.divf %221, %222 : vector<2x32xf32>
    %224 = arith.mulf %215, %197 : vector<2x32xf32>
    %225 = arith.mulf %209, %217 : vector<2x32xf32>
    %226 = arith.addf %224, %225 : vector<2x32xf32>
    %227 = math.tanh %226 : vector<2x32xf32>
    %228 = arith.mulf %223, %227 : vector<2x32xf32>
    %229 = vector.extract_strided_slice %51 {offsets = [0, 6, 0], sizes = [2, 1, 128], strides = [1, 1, 1]} : vector<2x8x128xf32> to vector<2x1x128xf32>
    %230 = vector.shape_cast %229 : vector<2x1x128xf32> to vector<2x128xf32>
    %cst_74 = arith.constant dense<0.000000e+00> : vector<2x128xf32>
    %231 = tpu.matmul %228, %52, %cst_74 {dimension_numbers = #tpu.dot_dimension_numbers<[1], [0], [0], [1], [0, 0, 1, 1], [], []>} : vector<2x32xf32>, vector<32x128xf32>, vector<2x128xf32> -> vector<2x128xf32>
    %232 = arith.addf %230, %231 : vector<2x128xf32>
    %233 = vector.extract_strided_slice %232 {offsets = [0, 0], sizes = [2, 32], strides = [1, 1]} : vector<2x128xf32> to vector<2x32xf32>
    %234 = arith.negf %233 : vector<2x32xf32>
    %235 = math.exp %234 : vector<2x32xf32>
    %cst_75 = arith.constant 1.000000e+00 : f32
    %236 = vector.broadcast %cst_75 : f32 to vector<2x32xf32>
    %237 = arith.addf %236, %235 : vector<2x32xf32>
    %238 = arith.divf %236, %237 : vector<2x32xf32>
    %239 = vector.extract_strided_slice %232 {offsets = [0, 32], sizes = [2, 32], strides = [1, 1]} : vector<2x128xf32> to vector<2x32xf32>
    %240 = arith.negf %239 : vector<2x32xf32>
    %241 = math.exp %240 : vector<2x32xf32>
    %cst_76 = arith.constant 1.000000e+00 : f32
    %242 = vector.broadcast %cst_76 : f32 to vector<2x32xf32>
    %243 = arith.addf %242, %241 : vector<2x32xf32>
    %244 = arith.divf %242, %243 : vector<2x32xf32>
    %245 = vector.extract_strided_slice %232 {offsets = [0, 64], sizes = [2, 32], strides = [1, 1]} : vector<2x128xf32> to vector<2x32xf32>
    %246 = math.tanh %245 : vector<2x32xf32>
    %247 = vector.extract_strided_slice %232 {offsets = [0, 96], sizes = [2, 32], strides = [1, 1]} : vector<2x128xf32> to vector<2x32xf32>
    %248 = arith.negf %247 : vector<2x32xf32>
    %249 = math.exp %248 : vector<2x32xf32>
    %cst_77 = arith.constant 1.000000e+00 : f32
    %250 = vector.broadcast %cst_77 : f32 to vector<2x32xf32>
    %251 = arith.addf %250, %249 : vector<2x32xf32>
    %252 = arith.divf %250, %251 : vector<2x32xf32>
    %253 = arith.mulf %244, %226 : vector<2x32xf32>
    %254 = arith.mulf %238, %246 : vector<2x32xf32>
    %255 = arith.addf %253, %254 : vector<2x32xf32>
    %256 = math.tanh %255 : vector<2x32xf32>
    %257 = arith.mulf %252, %256 : vector<2x32xf32>
    %258 = vector.extract_strided_slice %51 {offsets = [0, 7, 0], sizes = [2, 1, 128], strides = [1, 1, 1]} : vector<2x8x128xf32> to vector<2x1x128xf32>
    %259 = vector.shape_cast %258 : vector<2x1x128xf32> to vector<2x128xf32>
    %cst_78 = arith.constant dense<0.000000e+00> : vector<2x128xf32>
    %260 = tpu.matmul %257, %52, %cst_78 {dimension_numbers = #tpu.dot_dimension_numbers<[1], [0], [0], [1], [0, 0, 1, 1], [], []>} : vector<2x32xf32>, vector<32x128xf32>, vector<2x128xf32> -> vector<2x128xf32>
    %261 = arith.addf %259, %260 : vector<2x128xf32>
    %262 = vector.extract_strided_slice %261 {offsets = [0, 0], sizes = [2, 32], strides = [1, 1]} : vector<2x128xf32> to vector<2x32xf32>
    %263 = arith.negf %262 : vector<2x32xf32>
    %264 = math.exp %263 : vector<2x32xf32>
    %cst_79 = arith.constant 1.000000e+00 : f32
    %265 = vector.broadcast %cst_79 : f32 to vector<2x32xf32>
    %266 = arith.addf %265, %264 : vector<2x32xf32>
    %267 = arith.divf %265, %266 : vector<2x32xf32>
    %268 = vector.extract_strided_slice %261 {offsets = [0, 32], sizes = [2, 32], strides = [1, 1]} : vector<2x128xf32> to vector<2x32xf32>
    %269 = arith.negf %268 : vector<2x32xf32>
    %270 = math.exp %269 : vector<2x32xf32>
    %cst_80 = arith.constant 1.000000e+00 : f32
    %271 = vector.broadcast %cst_80 : f32 to vector<2x32xf32>
    %272 = arith.addf %271, %270 : vector<2x32xf32>
    %273 = arith.divf %271, %272 : vector<2x32xf32>
    %274 = vector.extract_strided_slice %261 {offsets = [0, 64], sizes = [2, 32], strides = [1, 1]} : vector<2x128xf32> to vector<2x32xf32>
    %275 = math.tanh %274 : vector<2x32xf32>
    %276 = vector.extract_strided_slice %261 {offsets = [0, 96], sizes = [2, 32], strides = [1, 1]} : vector<2x128xf32> to vector<2x32xf32>
    %277 = arith.negf %276 : vector<2x32xf32>
    %278 = math.exp %277 : vector<2x32xf32>
    %cst_81 = arith.constant 1.000000e+00 : f32
    %279 = vector.broadcast %cst_81 : f32 to vector<2x32xf32>
    %280 = arith.addf %279, %278 : vector<2x32xf32>
    %281 = arith.divf %279, %280 : vector<2x32xf32>
    %282 = arith.mulf %273, %255 : vector<2x32xf32>
    %283 = arith.mulf %267, %275 : vector<2x32xf32>
    %284 = arith.addf %282, %283 : vector<2x32xf32>
    %285 = math.tanh %284 : vector<2x32xf32>
    %286 = arith.mulf %281, %285 : vector<2x32xf32>
    %c0_82 = arith.constant 0 : index
    %c0_83 = arith.constant 0 : index
    %287 = vector.load %arg18[%c0_82, %c0_83] : memref<8x16xf32, #tpu.memory_space<vmem>>, vector<8x16xf32>
    %cst_84 = arith.constant dense<0.000000e+00> : vector<2x16xf32>
    %288 = tpu.matmul %21, %287, %cst_84 {dimension_numbers = #tpu.dot_dimension_numbers<[1], [0], [0], [1], [0, 0, 1, 1], [], []>} : vector<2x8xf32>, vector<8x16xf32>, vector<2x16xf32> -> vector<2x16xf32>
    %c0_85 = arith.constant 0 : index
    %c0_86 = arith.constant 0 : index
    %289 = vector.load %arg19[%c0_85, %c0_86] : memref<1x16xf32, #tpu.memory_space<vmem>>, vector<1x16xf32>
    %290 = vector.broadcast %289 : vector<1x16xf32> to vector<2x16xf32>
    %291 = arith.addf %288, %290 : vector<2x16xf32>
    %c0_87 = arith.constant 0 : index
    %c0_88 = arith.constant 0 : index
    %292 = vector.load %arg20[%c0_87, %c0_88] : memref<8x16xf32, #tpu.memory_space<vmem>>, vector<8x16xf32>
    %cst_89 = arith.constant dense<0.000000e+00> : vector<2x16xf32>
    %293 = tpu.matmul %43, %292, %cst_89 {dimension_numbers = #tpu.dot_dimension_numbers<[1], [0], [0], [1], [0, 0, 1, 1], [], []>} : vector<2x8xf32>, vector<8x16xf32>, vector<2x16xf32> -> vector<2x16xf32>
    %c0_90 = arith.constant 0 : index
    %c0_91 = arith.constant 0 : index
    %294 = vector.load %arg21[%c0_90, %c0_91] : memref<1x16xf32, #tpu.memory_space<vmem>>, vector<1x16xf32>
    %295 = vector.broadcast %294 : vector<1x16xf32> to vector<2x16xf32>
    %296 = arith.addf %293, %295 : vector<2x16xf32>
    %c0_92 = arith.constant 0 : index
    %c0_93 = arith.constant 0 : index
    %297 = vector.load %arg22[%c0_92, %c0_93] : memref<32x16xf32, #tpu.memory_space<vmem>>, vector<32x16xf32>
    %cst_94 = arith.constant dense<0.000000e+00> : vector<2x16xf32>
    %298 = tpu.matmul %286, %297, %cst_94 {dimension_numbers = #tpu.dot_dimension_numbers<[1], [0], [0], [1], [0, 0, 1, 1], [], []>} : vector<2x32xf32>, vector<32x16xf32>, vector<2x16xf32> -> vector<2x16xf32>
    %c0_95 = arith.constant 0 : index
    %c0_96 = arith.constant 0 : index
    %299 = vector.load %arg23[%c0_95, %c0_96] : memref<1x16xf32, #tpu.memory_space<vmem>>, vector<1x16xf32>
    %300 = vector.broadcast %299 : vector<1x16xf32> to vector<2x16xf32>
    %301 = arith.addf %298, %300 : vector<2x16xf32>
    %302 = arith.mulf %291, %296 : vector<2x16xf32>
    %303 = arith.mulf %302, %301 : vector<2x16xf32>
    %304 = vector.extract_strided_slice %303 {offsets = [0, 0], sizes = [2, 4], strides = [1, 1]} : vector<2x16xf32> to vector<2x4xf32>
    %305 = vector.extract_strided_slice %303 {offsets = [0, 4], sizes = [2, 4], strides = [1, 1]} : vector<2x16xf32> to vector<2x4xf32>
    %306 = arith.addf %304, %305 : vector<2x4xf32>
    %307 = vector.extract_strided_slice %303 {offsets = [0, 8], sizes = [2, 4], strides = [1, 1]} : vector<2x16xf32> to vector<2x4xf32>
    %308 = arith.addf %306, %307 : vector<2x4xf32>
    %309 = vector.extract_strided_slice %303 {offsets = [0, 12], sizes = [2, 4], strides = [1, 1]} : vector<2x16xf32> to vector<2x4xf32>
    %310 = arith.addf %308, %309 : vector<2x4xf32>
    %c0_97 = arith.constant 0 : index
    %c0_98 = arith.constant 0 : index
    %311 = vector.load %arg24[%c0_97, %c0_98] : memref<1x4xf32, #tpu.memory_space<vmem>>, vector<1x4xf32>
    %312 = vector.broadcast %311 : vector<1x4xf32> to vector<2x4xf32>
    %313 = arith.addf %310, %312 : vector<2x4xf32>
    %c0_99 = arith.constant 0 : index
    %c0_100 = arith.constant 0 : index
    %314 = vector.load %arg25[%c0_99, %c0_100] : memref<2x4xf32, #tpu.memory_space<vmem>>, vector<2x4xf32>
    tpu.vector_store %arg25[%c0_99, %c0_100], %313 {strides = array<i32>} : memref<2x4xf32, #tpu.memory_space<vmem>>, vector<2x4xf32>,
    return
  }
}

</mosaic_0001>

<bundles_post_ra>
// kernel: tpu_custom_call.1
= control target key start
LH: loop header
LB: loop body
LE: loop exit
PB: predicated region body
PF: predicated region fallthrough
CT: control target
= control target key end

     0   :  { %s3561_s0 = inlined_call_operand.hbm [shape: f32[2,16], index: 0, kind: input, shape index: {}]   ;;  %s3562_s1 = inlined_call_operand.hbm [shape: f32[2,16], index: 1, kind: input, shape index: {}]   ;;  %s3563_s2 = inlined_call_operand.vmem [shape: f32[2,8,16], index: 2, kind: input, shape index: {}]   ;;  %s3564_s3 = inlined_call_operand.hbm [shape: f32[16,32], index: 3, kind: input, shape index: {}]   ;;  %s3565_s4 = inlined_call_operand.hbm [shape: f32[1,32], index: 4, kind: input, shape index: {}]   ;;  %s3566_s5 = inlined_call_operand.vmem [shape: f32[32,32], index: 5, kind: input, shape index: {}]   ;;  %s3567_s6 = inlined_call_operand.hbm [shape: f32[1,32], index: 6, kind: input, shape index: {}]   ;;  %s3568_s7 = inlined_call_operand.vmem [shape: f32[32,8], index: 7, kind: input, shape index: {}]   ;;  %s3569_s8 = inlined_call_operand.hbm [shape: f32[1,8], index: 8, kind: input, shape index: {}]   ;;  %s3570_s9 = inlined_call_operand.vmem [shape: f32[16,32], index: 9, kind: input, shape index: {}]   ;;  %s3571_s10 = inlined_call_operand.hbm [shape: f32[1,32], index: 10, kind: input, shape index: {}]   ;;  %s3572_s11 = inlined_call_operand.vmem [shape: f32[32,32], index: 11, kind: input, shape index: {}]   ;;  %s3573_s12 = inlined_call_operand.hbm [shape: f32[1,32], index: 12, kind: input, shape index: {}]   ;;  %s3574_s13 = inlined_call_operand.vmem [shape: f32[32,8], index: 13, kind: input, shape index: {}]   ;;  %s3575_s14 = inlined_call_operand.hbm [shape: f32[1,8], index: 14, kind: input, shape index: {}]   ;;  %s3576_s15 = inlined_call_operand.vmem [shape: f32[16,128], index: 15, kind: input, shape index: {}]   ;;  %s3577_s16 = inlined_call_operand.vmem [shape: f32[32,128], index: 16, kind: input, shape index: {}]   ;;  %s3578_s17 = inlined_call_operand.vmem [shape: f32[1,128], index: 17, kind: input, shape index: {}]   ;;  %s3579_s18 = inlined_call_operand.vmem [shape: f32[8,16], index: 18, kind: input, shape index: {}]   ;;  %s3580_s19 = inlined_call_operand.vmem [shape: f32[1,16], index: 19, kind: input, shape index: {}]   ;;  %s3581_s20 = inlined_call_operand.vmem [shape: f32[8,16], index: 20, kind: input, shape index: {}]   ;;  %s3582_s21 = inlined_call_operand.vmem [shape: f32[1,16], index: 21, kind: input, shape index: {}]   ;;  %s3583_s22 = inlined_call_operand.vmem [shape: f32[32,16], index: 22, kind: input, shape index: {}]   ;;  %s3584_s23 = inlined_call_operand.vmem [shape: f32[1,16], index: 23, kind: input, shape index: {}]   ;;  %s3585_s24 = inlined_call_operand.vmem [shape: f32[1,4], index: 24, kind: input, shape index: {}]   ;;  %s3586_s25 = inlined_call_operand.hbm [shape: f32[2,4], index: 25, kind: output, shape index: {}]  }
   0x1   :  { %3598 = sst [smem:[#allocation24_spill]] %s3561_s0 }
   0x2   :  { %3599 = sst [smem:[#allocation25_spill]] %s3562_s1 }
   0x3   :  { %3600 = sst [smem:[#allocation26_spill]] %s3563_s2 }
   0x4   :  { %3601 = sst [smem:[#allocation27_spill]] %s3564_s3 }
   0x5   :  { %3602 = sst [smem:[#allocation28_spill]] %s3565_s4 }
   0x6   :  { %3603 = sst [smem:[#allocation29_spill]] %s3566_s5 }
   0x7   :  { %3604 = sst [smem:[#allocation30_spill]] %s3567_s6 }
   0x8   :  { %3605 = sst [smem:[#allocation31_spill]] %s3568_s7 }
   0x9   :  { %3606 = sst [smem:[#allocation32_spill]] %s3569_s8 }
   0xa   :  { %3607 = sst [smem:[#allocation33_spill]] %s3570_s9 }
   0xb   :  { %3608 = sst [smem:[#allocation34_spill]] %s3585_s24 }
   0xc   :  { %3609 = sst [smem:[#allocation35_spill]] %s3586_s25 }
   0xd   :  { %30 = vsyncpa [#allocation3], 0 }
   0xe   :  { %31 = vsyncpa [#allocation6], 0 }
   0xf   :  { %32 = vsyncpa [#allocation9], 0 }
  0x10   :  { %33 = vsyncpa [#allocation12], 0 }
  0x11   :  { %34 = vsyncpa [#allocation15], 0 }
  0x12   :  { %35 = vsyncpa [#allocation4], 0  ;;  %s2961_s29 = smov [#allocation5]   ;;  %s2962_s6 = smov [#allocation8]  }
  0x13   :  { %s52_s2 = sshll.u32 %s2961_s29, 4  ;;  %s76_s30 = sshll.u32 %s2962_s6, 4  ;;  %s53_s2 = int_to_ptr.vmem [resolvable:$true] %s52_s2  ;;  %s77_s30 = int_to_ptr.vmem [resolvable:$true] %s76_s30 }
  0x14   :  { %s3610_s26 = sld [smem:[#allocation25_spill]] }
  0x1a   :  { %s2729_s1 = scalar_lea.hbm %s3610_s26, 32 }
  0x1b   :  { %p2730_p0 = scmp.ne.s32.totalorder %s3610_s26, %s2729_s1  ;;  %p2733_p1 = scmp.lt.u32.totalorder %s2729_s1, %s3610_s26 }
  0x1d   :  { %p2735_p2 = pnand %p2733_p1, %p2730_p0 }
  0x1f   :  { %2738 = shalt.err (!%p2735_p2)
}
  0x20   :  { %s2739_s9 = scalar_lea.vmem %s53_s2, 32  ;;  %p2744_p4 = scmp.lt.s32.totalorder %s53_s2, %s53_s2 }
  0x21   :  { %p2740_p3 = scmp.ne.s32.totalorder %s53_s2, %s2739_s9  ;;  %p2745_p5 = scmp.lt.s32.totalorder %s2739_s9, %s2739_s9 }
  0x23   :  { %p2746_p6 = por %p2745_p5, %p2744_p4 }
  0x25   :  { %p2747_p7 = pnand %p2746_p6, %p2740_p3 }
  0x27   :  { %2750 = shalt.err (!%p2747_p7)
}
  0x28   :  { %55 = dma.hbm_to_vmem [thread:$0]  %s3610_s26, 32, %s53_s2, [#allocation6]  }
  0x29   :  { %s3611_s7 = sld [smem:[#allocation28_spill]] }
  0x2f   :  { %s2751_s3 = scalar_lea.hbm %s3611_s7, 16 }
  0x30   :  { %p2752_p8 = scmp.ne.s32.totalorder %s3611_s7, %s2751_s3  ;;  %p2755_p9 = scmp.lt.u32.totalorder %s2751_s3, %s3611_s7 }
  0x32   :  { %p2757_p10 = pnand %p2755_p9, %p2752_p8 }
  0x34   :  { %2760 = shalt.err (!%p2757_p10)
}
  0x35   :  { %s2761_s28 = scalar_lea.vmem %s77_s30, 16  ;;  %s2765_s9 = scalar_lea.vmem %s77_s30, 32 }
  0x36   :  { %p2762_p11 = scmp.ne.s32.totalorder %s77_s30, %s2761_s28  ;;  %p2766_p12 = scmp.lt.s32.totalorder %s77_s30, %s77_s30 }
  0x37   :  { %p2767_p13 = scmp.lt.s32.totalorder %s2765_s9, %s2761_s28 }
  0x39   :  { %p2768_p0 = por %p2767_p13, %p2766_p12 }
  0x3b   :  { %p2769_p1 = pnand %p2768_p0, %p2762_p11 }
  0x3d   :  { %2772 = shalt.err (!%p2769_p1)
}
  0x3e   :  { %79 = dma.hbm_to_vmem [thread:$0]  %s3611_s7, 16, %s77_s30, [#allocation9]  }
  0x3f   :  { %s2963_s5 = smov [#allocation11]   ;;  %s2964_s29 = smov [#allocation14]  }
  0x40   :  { %s100_s0 = sshll.u32 %s2963_s5, 4  ;;  %s124_s6 = sshll.u32 %s2964_s29, 4  ;;  %s101_s0 = int_to_ptr.vmem [resolvable:$true] %s100_s0  ;;  %s125_s6 = int_to_ptr.vmem [resolvable:$true] %s124_s6 }
  0x41   :  { %s3612_s27 = sld [smem:[#allocation32_spill]] }
  0x47   :  { %s2773_s1 = scalar_lea.hbm %s3612_s27, 16 }
  0x48   :  { %p2774_p2 = scmp.ne.s32.totalorder %s3612_s27, %s2773_s1  ;;  %p2777_p3 = scmp.lt.u32.totalorder %s2773_s1, %s3612_s27 }
  0x4a   :  { %p2779_p4 = pnand %p2777_p3, %p2774_p2 }
  0x4c   :  { %2782 = shalt.err (!%p2779_p4)
}
  0x4d   :  { %s2783_s30 = scalar_lea.vmem %s101_s0, 16  ;;  %s2787_s7 = scalar_lea.vmem %s101_s0, 32 }
  0x4e   :  { %p2784_p5 = scmp.ne.s32.totalorder %s101_s0, %s2783_s30  ;;  %p2788_p6 = scmp.lt.s32.totalorder %s101_s0, %s101_s0 }
  0x4f   :  { %p2789_p7 = scmp.lt.s32.totalorder %s2787_s7, %s2783_s30 }
  0x51   :  { %p2790_p8 = por %p2789_p7, %p2788_p6 }
  0x53   :  { %p2791_p9 = pnand %p2790_p8, %p2784_p5 }
  0x55   :  { %2794 = shalt.err (!%p2791_p9)
}
  0x56   :  { %103 = dma.hbm_to_vmem [thread:$0]  %s3612_s27, 16, %s101_s0, [#allocation12]  }
  0x57   :  { %s2795_s29 = scalar_lea.hbm %s3573_s12, 16 }
  0x58   :  { %p2796_p10 = scmp.ne.s32.totalorder %s3573_s12, %s2795_s29  ;;  %p2799_p11 = scmp.lt.u32.totalorder %s2795_s29, %s3573_s12 }
  0x5a   :  { %p2801_p12 = pnand %p2799_p11, %p2796_p10 }
  0x5c   :  { %2804 = shalt.err (!%p2801_p12)
}
  0x5d   :  { %s2805_s28 = scalar_lea.vmem %s125_s6, 16  ;;  %s2809_s9 = scalar_lea.vmem %s125_s6, 32 }
  0x5e   :  { %p2806_p13 = scmp.ne.s32.totalorder %s125_s6, %s2805_s28  ;;  %p2810_p0 = scmp.lt.s32.totalorder %s125_s6, %s125_s6 }
  0x5f   :  { %p2811_p1 = scmp.lt.s32.totalorder %s2809_s9, %s2805_s28 }
  0x61   :  { %p2812_p2 = por %p2811_p1, %p2810_p0 }
  0x63   :  { %p2813_p3 = pnand %p2812_p2, %p2806_p13 }
  0x65   :  { %2816 = shalt.err (!%p2813_p3)
}
  0x66   :  { %127 = dma.hbm_to_vmem [thread:$0]  %s3573_s12, 16, %s125_s6, [#allocation15]  }
  0x67   :  { %s2965_s30 = smov [#allocation2]   ;;  %s2966_s2 = smov [#allocation7]  }
  0x68   :  { %s42_s7 = sshll.u32 %s2965_s30, 4  ;;  %s63_s26 = sshll.u32 %s2966_s2, 4  ;;  %s43_s7 = int_to_ptr.vmem [resolvable:$true] %s42_s7  ;;  %s3159_s26 = int_to_ptr.vmem [resolvable:$true] %s63_s26 }
  0x69   :  { %s3613_s29 = sld [smem:[#allocation24_spill]] }
  0x6f   :  { %s2817_s3 = scalar_lea.hbm %s3613_s29, 32 }
  0x70   :  { %p2818_p4 = scmp.ne.s32.totalorder %s3613_s29, %s2817_s3  ;;  %p2821_p5 = scmp.lt.u32.totalorder %s2817_s3, %s3613_s29 }
  0x72   :  { %p2823_p6 = pnand %p2821_p5, %p2818_p4 }
  0x74   :  { %2826 = shalt.err (!%p2823_p6)
}
  0x75   :  { %s2827_s12 = scalar_lea.vmem %s43_s7, 32  ;;  %p2832_p8 = scmp.lt.s32.totalorder %s43_s7, %s43_s7 }
  0x76   :  { %p2828_p7 = scmp.ne.s32.totalorder %s43_s7, %s2827_s12  ;;  %p2833_p9 = scmp.lt.s32.totalorder %s2827_s12, %s2827_s12 }
  0x78   :  { %p2834_p10 = por %p2833_p9, %p2832_p8 }
  0x7a   :  { %p2835_p11 = pnand %p2834_p10, %p2828_p7 }
  0x7c   :  { %2838 = shalt.err (!%p2835_p11)
}
  0x7d   :  { %45 = dma.hbm_to_vmem [thread:$0]  %s3613_s29, 32, %s43_s7, [#allocation3]  }
  0x7e   :  { %s3614_s30 = sld [smem:[#allocation27_spill]] }
  0x84   :  { %s2839_s2 = scalar_lea.hbm %s3614_s30, 256 }
  0x85   :  { %p2840_p12 = scmp.ne.s32.totalorder %s3614_s30, %s2839_s2  ;;  %p2843_p13 = scmp.lt.u32.totalorder %s2839_s2, %s3614_s30 }
  0x87   :  { %p2845_p0 = pnand %p2843_p13, %p2840_p12 }
  0x89   :  { %2848 = shalt.err (!%p2845_p0)
}
  0x8a   :  { %s2849_s1 = scalar_lea.vmem %s3159_s26, 256  ;;  %p2854_p2 = scmp.lt.s32.totalorder %s3159_s26, %s3159_s26 }
  0x8b   :  { %p2850_p1 = scmp.ne.s32.totalorder %s3159_s26, %s2849_s1  ;;  %p2855_p3 = scmp.lt.s32.totalorder %s2849_s1, %s2849_s1 }
  0x8d   :  { %p2856_p4 = por %p2855_p3, %p2854_p2 }
  0x8f   :  { %p2857_p5 = pnand %p2856_p4, %p2850_p1 }
  0x91   :  { %2860 = shalt.err (!%p2857_p5)
}
  0x92   :  { %s2967_s7 = smov 128   ;;  %s2968_s29 = smov 8  }
  0x93   :  { %69 = dma.hbm_to_vmem [thread:$0]  %s3614_s30, 256, %s3159_s26, [#allocation6], %s2967_s7, %s2967_s7, %s2968_s29  }
  0x94   :  { %s2969_s12 = smov [#allocation10]   ;;  %s2970_s9 = smov [#allocation13]  }
  0x95   :  { %s88_s6 = sshll.u32 %s2969_s12, 4  ;;  %s112_s0 = sshll.u32 %s2970_s9, 4  ;;  %s89_s6 = int_to_ptr.vmem [resolvable:$true] %s88_s6  ;;  %s113_s0 = int_to_ptr.vmem [resolvable:$true] %s112_s0 }
  0x96   :  { %s3615_s25 = sld [smem:[#allocation30_spill]] }
  0x9c   :  { %s2861_s5 = scalar_lea.hbm %s3615_s25, 16 }
  0x9d   :  { %p2862_p6 = scmp.ne.s32.totalorder %s3615_s25, %s2861_s5  ;;  %p2865_p7 = scmp.lt.u32.totalorder %s2861_s5, %s3615_s25 }
  0x9f   :  { %p2867_p8 = pnand %p2865_p7, %p2862_p6 }
  0xa1   :  { %2870 = shalt.err (!%p2867_p8)
}
  0xa2   :  { %s2871_s26 = scalar_lea.vmem %s89_s6, 16  ;;  %s2875_s30 = scalar_lea.vmem %s89_s6, 32 }
  0xa3   :  { %p2872_p9 = scmp.ne.s32.totalorder %s89_s6, %s2871_s26  ;;  %p2876_p10 = scmp.lt.s32.totalorder %s89_s6, %s89_s6 }
  0xa4   :  { %p2877_p11 = scmp.lt.s32.totalorder %s2875_s30, %s2871_s26 }
  0xa6   :  { %p2878_p12 = por %p2877_p11, %p2876_p10 }
  0xa8   :  { %p2879_p13 = pnand %p2878_p12, %p2872_p9 }
  0xaa   :  { %2882 = shalt.err (!%p2879_p13)
}
  0xab   :  { %91 = dma.hbm_to_vmem [thread:$0]  %s3615_s25, 16, %s89_s6, [#allocation9]  }
  0xac   :  { %s2883_s12 = scalar_lea.hbm %s3571_s10, 16 }
  0xad   :  { %p2884_p0 = scmp.ne.s32.totalorder %s3571_s10, %s2883_s12  ;;  %p2887_p1 = scmp.lt.u32.totalorder %s2883_s12, %s3571_s10 }
  0xaf   :  { %p2889_p2 = pnand %p2887_p1, %p2884_p0 }
  0xb1   :  { %2892 = shalt.err (!%p2889_p2)
}
  0xb2   :  { %s2893_s5 = scalar_lea.vmem %s113_s0, 16  ;;  %s2897_s3 = scalar_lea.vmem %s113_s0, 32 }
  0xb3   :  { %p2894_p3 = scmp.ne.s32.totalorder %s113_s0, %s2893_s5  ;;  %p2898_p4 = scmp.lt.s32.totalorder %s113_s0, %s113_s0 }
  0xb4   :  { %p2899_p5 = scmp.lt.s32.totalorder %s2897_s3, %s2893_s5 }
  0xb6   :  { %p2900_p6 = por %p2899_p5, %p2898_p4 }
  0xb8   :  { %p2901_p7 = pnand %p2900_p6, %p2894_p3 }
  0xba   :  { %2904 = shalt.err (!%p2901_p7)
}
  0xbb   :  { %115 = dma.hbm_to_vmem [thread:$0]  %s3571_s10, 16, %s113_s0, [#allocation12]  }
  0xbc   :  { %s2971_s8 = smov [#allocation16]   ;;  %s2905_s7 = scalar_lea.hbm %s3575_s14, 16 }
  0xbd   :  { %s136_s1 = sshll.u32 %s2971_s8, 4  ;;  %p2906_p8 = scmp.ne.s32.totalorder %s3575_s14, %s2905_s7  ;;  %s137_s1 = int_to_ptr.vmem [resolvable:$true] %s136_s1 }
  0xbe   :  { %p2909_p9 = scmp.lt.u32.totalorder %s2905_s7, %s3575_s14 }
  0xc0   :  { %p2911_p10 = pnand %p2909_p9, %p2906_p8 }
  0xc2   :  { %2914 = shalt.err (!%p2911_p10)
}
  0xc3   :  { %s2915_s24 = scalar_lea.vmem %s137_s1, 16  ;;  %s2919_s10 = scalar_lea.vmem %s137_s1, 32 }
  0xc4   :  { %p2916_p11 = scmp.ne.s32.totalorder %s137_s1, %s2915_s24  ;;  %p2920_p12 = scmp.lt.s32.totalorder %s137_s1, %s137_s1 }
  0xc5   :  { %p2921_p13 = scmp.lt.s32.totalorder %s2919_s10, %s2915_s24 }
  0xc7   :  { %p2922_p0 = por %p2921_p13, %p2920_p12 }
  0xc9   :  { %p2923_p1 = pnand %p2922_p0, %p2916_p11 }
  0xcb   :  { %2926 = shalt.err (!%p2923_p1)
}
  0xcc   :  { %139 = dma.hbm_to_vmem [thread:$0]  %s3575_s14, 16, %s137_s1, [#allocation15]  }
  0xcd   :  { %2949 = dma.done.wait [#allocation3], 32  }
  0xce   :  { %2950 = vsyncadd [#allocation3], 4294967264 }
  0xcf   :  { %2951 = dma.done.wait [#allocation6], 288  }
  0xd0   :  { %2952 = vsyncadd [#allocation6], 4294967008 }
  0xd1   :  { %2953 = dma.done.wait [#allocation9], 32  }
  0xd2   :  { %2954 = vsyncadd [#allocation9], 4294967264 }
  0xd3   :  { %2955 = dma.done.wait [#allocation12], 32  }
  0xd4   :  { %2956 = vsyncadd [#allocation12], 4294967264 }
  0xd5   :  { %2957 = dma.done.wait [#allocation15], 32  }
  0xd6   :  { %2958 = vsyncadd [#allocation15], 4294967264  ;;  %v2972_v0 = vmov 0.0|0.0   ;;  %vm2973_vm0 = vmmov 0   ;;  %v2974_v1 = vmov 0.0   ;;  %v188_v2 = vld [vmem:[#allocation7] sm:$0xff] }
  0xd7   :  { %2493 = vmatprep.subr.bf16.mxu0 %v2972_v0  ;;  %2323 = vmatprep.mubr.msk.f32.mxu0 %vm2973_vm0, %v2974_v1  ;;  %v189_v3 = vld [vmem:[#allocation7 + $0x8] sm:$0xff]  ;;  %s3616_s2 = sld [smem:[#allocation29_spill]]  ;;  %v187_v8 = vld [vmem:[#allocation2] sm:$0x3]  ;;  %vm207_vm1 = vcmask 130048   ;;  %s3617_s7 = sld [smem:[#allocation31_spill]] }
  0xd8   :  { %2496 = vmatprep.subr.bf16.mxu1 %v2972_v0  ;;  %2334 = vmatprep.mubr.msk.f32.mxu1 %vm2973_vm0, %v2974_v1  ;;  %v2494_v4 = vpack.c.bf16 %v189_v3, %v188_v2  ;;  %v2195_v15 = vld [vmem:[#allocation8] ss:$0 sm:$0xff]  ;;  %s3618_s24 = sld [smem:[#allocation33_spill]]  ;;  %vm288_vm2 = vcmask 261120   ;;  %v443_v23 = vld [vmem:[#allocation5] sm:$0x3] }
  0xd9   :  { %v2197_v27 = vld [vmem:[#allocation10] ss:$0 sm:$0xff]  ;;  %v447_v28 = vld [vmem:[%s3572_s11] sm:$0xff]  ;;  %v448_v29 = vld [vmem:[%s3572_s11 + $0x8] sm:$0xff]  ;;  %s3619_s8 = sld [smem:[#allocation26_spill]]  ;;  %s2975_s4 = smov 64  }
  0xda   :  { %2495 = vmatpush3.bf16.msra.mxu0 %v2494_v4  ;;  %v2512_v33 = vpack.c.bf16 %v448_v29, %v447_v28  ;;  %v2201_v34 = vld [vmem:[#allocation13] ss:$0 sm:$0xff]  ;;  %v449_v36 = vld [vmem:[%s3572_s11 + $0x10] sm:$0xff]  ;;  %v452_v43 = vld [vmem:[%s3574_s13] sm:$0xff]  ;;  %vm923_vm3 = vcmask 1041409   ;;  %vm1906_vm4 = vcmask 64512  }
  0xdb   :  { %2502 = vmatprep.subr.bf16.mxu0 %v2972_v0  ;;  %v450_v37 = vld [vmem:[%s3572_s11 + $0x18] sm:$0xff]  ;;  %v453_v44 = vld [vmem:[%s3574_s13 + $0x8] sm:$0xff]  ;;  %v454_v46 = vld [vmem:[%s3574_s13 + $0x10] sm:$0xff]  ;;  %s2977_s25 = smov 120   ;;  %s2979_s1 = smov 116   ;;  %vm2174_vm5 = vcmask 25600  }
  0xdc   :  { %v2515_v41 = vpack.c.bf16 %v450_v37, %v449_v36  ;;  %v2518_v45 = vpack.c.bf16 %v453_v44, %v452_v43  ;;  %v455_v47 = vld [vmem:[%s3574_s13 + $0x18] sm:$0xff]  ;;  %v699_v49 = vld [vmem:[%s3576_s15] sm:$0xff]  ;;  %v700_v50 = vld [vmem:[%s3576_s15 + $0x8] sm:$0xff]  ;;  %s3620_s30 = sld [smem:[#allocation34_spill]] }
  0xdd   :  { %v191_v5 = vld [vmem:[%s3616_s2] sm:$0xff]  ;;  %v192_v6 = vld [vmem:[%s3616_s2 + $0x8] sm:$0xff]  ;;  %2324 = vmatmul.mubr.msk.f32.vlgmr.msra.gmra.mrb[0].mxu0 %vm207_vm1, %v187_v8  ;;  %v193_v9 = vld [vmem:[%s3616_s2 + $0x10] sm:$0xff]  ;;  %v2521_v48 = vpack.c.bf16 %v455_v47, %v454_v46  ;;  %v2523_v51 = vpack.c.bf16 %v700_v50, %v699_v49 }
  0xde   :  { %v2497_v7 = vpack.c.bf16 %v192_v6, %v191_v5  ;;  %2345 = vmatprep.mubr.msk.f32.mxu0 %vm2973_vm0, %v2974_v1  ;;  %v194_v10 = vld [vmem:[%s3616_s2 + $0x18] sm:$0xff]  ;;  %v196_v12 = vld [vmem:[%s3617_s7] sm:$0xff]  ;;  %v197_v13 = vld [vmem:[%s3617_s7 + $0x8] sm:$0xff] }
  0xdf   :  { %v2500_v11 = vpack.c.bf16 %v194_v10, %v193_v9  ;;  %v2503_v14 = vpack.c.bf16 %v197_v13, %v196_v12  ;;  %v444_v16 = vld [vmem:[%s3618_s24] sm:$0xff]  ;;  %v445_v17 = vld [vmem:[%s3618_s24 + $0x8] sm:$0xff]  ;;  %v198_v24 = vld [vmem:[%s3617_s7 + $0x10] sm:$0xff] }
  0xe0   :  { %2498 = vmatpush3.bf16.msra.mxu1 %v2497_v7  ;;  %v2509_v21 = vpack.c.bf16 %v445_v17, %v444_v16  ;;  %v199_v25 = vld [vmem:[%s3617_s7 + $0x18] sm:$0xff]  ;;  %v789_v52 = vld [vmem:[%s3577_s16] sm:$0xff]  ;;  %v790_v53 = vld [vmem:[%s3577_s16 + $0x8] sm:$0xff] }
  0xe1   :  { %2499 = vmatprep.subr.bf16.mxu1 %v2972_v0  ;;  %2504 = vmatpush3.bf16.msra.mxu0 %v2503_v14  ;;  %v2506_v26 = vpack.c.bf16 %v199_v25, %v198_v24  ;;  %v697_v54 = vld [vmem:[%s3619_s8] sm:$0xff]  ;;  %v698_v55 = vld [vmem:[%s3619_s8 + $0x8] sm:$0xff]  ;;  %v3328_v56 = vpack.c.bf16 %v790_v53, %v789_v52  ;;  %v791_v57 = vld [vmem:[%s3577_s16 + $0x10] sm:$0xff]  ;;  %s2978_s8 = smov 124  }
  0xe2   :  { %2505 = vmatprep.subr.bf16.mxu0 %v2972_v0  ;;  %v792_v58 = vld [vmem:[%s3577_s16 + $0x18] sm:$0xff]  ;;  %v2207_v9 = vld [vmem:[%s3578_s17] ss:$0 sm:$0xff]  ;;  %s2976_s17 = smov 32  }
  0xe3   :  { %v3341_v59 = vpack.c.bf16 %v792_v58, %v791_v57  ;;  %v2203_v62 = vld [vmem:[#allocation14] ss:$0 sm:$0xff] }
  0xe4   :  { %2501 = vmatpush3.bf16.msra.mxu1 %v2500_v11 }
  0xe5   :  { %2508 = vmatprep.subr.bf16.mxu1 %v2972_v0  ;;  %2507 = vmatpush3.bf16.msra.mxu0 %v2506_v26 }
  0xe6   :  { %2511 = vmatprep.subr.bf16.mxu0 %v2972_v0 }
 0x1b0   :  { %v277_v18 = vpop.f32.mrb[0].mxu0 }
 0x1b1   :  { %v278_v19 = vadd.f32 %v2195_v15, %v277_v18  ;;  %v2325_v20 = vpop.f32.mrb[1].mxu0 }
 0x1b3   :  { %v281_v22 = vmax.f32 %v278_v19, 0.0 }
 0x1b5   :  { %2335 = vmatmul.mubr.msk.f32.vlgmr.msra.gmra.mrb[0].mxu1 %vm288_vm2, %v281_v22 }
 0x1b6   :  { %2510 = vmatpush3.bf16.msra.mxu1 %v2509_v21  ;;  %2352 = vmatprep.mubr.msk.f32.mxu1 %vm2973_vm0, %v2974_v1 }
 0x1b7   :  { %2517 = vmatprep.subr.bf16.mxu1 %v2972_v0 }
 0x1b9   :  { %2353 = vmatmul.mubr.msk.f32.vlgmr.msra.gmra.mrb[2].mxu1 %vm207_vm1, %v443_v23 }
 0x1ba   :  { %2374 = vmatprep.mubr.msk.f32.mxu1 %vm2973_vm0, %v2974_v1  ;;  %2519 = vmatpush3.bf16.msra.mxu1 %v2518_v45 }
 0x1bb   :  { %2520 = vmatprep.subr.bf16.mxu1 %v2972_v0 }
 0x1be   :  { %2522 = vmatpush3.bf16.msra.mxu1 %v2521_v48 }
 0x1bf   :  { %2527 = vmatprep.subr.bf16.mxu1 %v2972_v0 }
 0x288   :  { %v358_v30 = vpop.f32.mrb[0].mxu1 }
 0x289   :  { %v359_v31 = vadd.f32 %v2197_v27, %v358_v30  ;;  %v2336_v32 = vpop.f32.mrb[1].mxu1 }
 0x28b   :  { %v362_v35 = vmax.f32 %v359_v31, 0.0 }
 0x28c   :  { %v532_v38 = vpop.f32.mrb[2].mxu1 }
 0x28d   :  { %2346 = vmatmul.mubr.msk.f32.vlgmr.msra.gmra.mrb[2].mxu0 %vm288_vm2, %v362_v35  ;;  %v533_v39 = vadd.f32 %v2201_v34, %v532_v38  ;;  %v2354_v40 = vpop.f32.mrb[3].mxu1 }
 0x28e   :  { %2513 = vmatpush3.bf16.msra.mxu0 %v2512_v33  ;;  %2363 = vmatprep.mubr.msk.f32.mxu0 %vm2973_vm0, %v2974_v1 }
 0x28f   :  { %2514 = vmatprep.subr.bf16.mxu0 %v2972_v0  ;;  %v536_v42 = vmax.f32 %v533_v39, 0.0 }
 0x292   :  { %2516 = vmatpush3.bf16.msra.mxu0 %v2515_v41 }
 0x293   :  { %2524 = vmatprep.subr.bf16.mxu0 %v2523_v51 }
 0x295   :  { %2364 = vmatmul.mubr.msk.f32.vlgmr.msra.gmra.mrb[4].mxu0 %vm288_vm2, %v536_v42 }
 0x296   :  { %2526 = vmatpush3.bf16.msra.mxu0 %v2523_v51  ;;  %2381 = vmatprep.mubr.msk.f32.mxu0 %vm207_vm1, %v697_v54 }
 0x297   :  { %2533 = vmatprep.subr.bf16.mxu0 %v2972_v0 }
 0x299   :  { %2382 = vmatmul.mubr.msk.f32.vlgmr.msra.gmra.mrb[6].mxu0 %vm207_vm1, %v698_v55 }
 0x29a   :  { %2535 = vmatpush3.bf16.msra.mxu0 %v3328_v56  ;;  %2403 = vmatprep.mubr.msk.f32.mxu0 %vm2973_vm0, %v2974_v1 }
 0x29b   :  { %2536 = vmatprep.subr.bf16.mxu0 %v2972_v0 }
 0x29e   :  { %2538 = vmatpush3.bf16.msra.mxu0 %v3341_v59 }
 0x29f   :  { %2545 = vmatprep.subr.bf16.mxu0 %v2972_v0 }
 0x360   :  { %v3345_v60 = vpop.f32.mrb[2].mxu0 }
 0x361   :  { %v2347_v61 = vpop.f32.mrb[3].mxu0 }
 0x368   :  { %v612_v63 = vpop.f32.mrb[4].mxu0 }
 0x369   :  { %v613_v2 = vadd.f32 %v2203_v62, %v612_v63  ;;  %v2365_v3 = vpop.f32.mrb[5].mxu0 }
 0x36b   :  { %v616_v4 = vmax.f32 %v613_v2, 0.0 }
 0x36c   :  { %v2383_v5 = vpop.f32.mrb[6].mxu0 }
 0x36d   :  { %2375 = vmatmul.mubr.msk.f32.vlgmr.msra.gmra.mrb[4].mxu1 %vm288_vm2, %v616_v4  ;;  %v780_v6 = vpop.f32.mrb[7].mxu0  ;;  %v3366_v10 = vadd.f32 %v2383_v5, %v2207_v9 }
 0x36e   :  { %2529 = vmatpush3.bf16.msra.mxu1 %v3328_v56  ;;  %2392 = vmatprep.mubr.msk.f32.mxu1 %vm2973_vm0, %v2974_v1  ;;  %v3368_v14 = vadd.f32 %v2207_v9, %v780_v6 }
 0x36f   :  { %2530 = vmatprep.subr.bf16.mxu1 %v2972_v0 }
 0x372   :  { %2532 = vmatpush3.bf16.msra.mxu1 %v3341_v59 }
 0x373   :  { %2539 = vmatprep.subr.bf16.mxu1 %v2972_v0 }
 0x375   :  { %2393 = vmatmul.mubr.f32.vlgmr.msra.gmra.mrb[6].mxu1 %v2974_v1 }
 0x376   :  { %2541 = vmatpush3.bf16.msra.mxu1 %v3328_v56  ;;  %2414 = vmatprep.mubr.msk.f32.mxu1 %vm2973_vm0, %v2974_v1 }
 0x377   :  { %2542 = vmatprep.subr.bf16.mxu1 %v2972_v0 }
 0x37a   :  { %2544 = vmatpush3.bf16.msra.mxu1 %v3341_v59 }
 0x37b   :  { %2551 = vmatprep.subr.bf16.mxu1 %v2972_v0 }
 0x440   :  { %v3361_v7 = vpop.f32.mrb[4].mxu1 }
 0x441   :  { %v2376_v8 = vpop.f32.mrb[5].mxu1 }
 0x448   :  { %v862_v11 = vpop.f32.mrb[6].mxu1 }
 0x449   :  { %v867_v12 = vrot.slane %v862_v11, 1  ;;  %v2394_v13 = vpop.f32.mrb[7].mxu1  ;;  %v870_v16 = vadd.f32 %v862_v11, %v3368_v14 }
 0x44b   :  { %v871_v15 = vadd.f32 %v867_v12, %v3366_v10  ;;  %v2210_v20 = vmul.f32 -1.442695, %v870_v16 }
 0x44d   :  { %2601 = vtanh.f32 %v871_v15  ;;  %v2211_v19 = vmul.f32 -1.442695, %v871_v15 }
 0x44e   :  { %2603 = vtanh.f32 %v870_v16 }
 0x44f   :  { %2605 = vpow2.f32 %v2211_v19 }
 0x450   :  { %2607 = vpow2.f32 %v2210_v20 }
 0x457   :  { %v2602_v17 = vpop.eup %2601 }
 0x458   :  { %892 = vrot.lane.b32.xlu0 %v2602_v17, %s2975_s4  ;;  %v2604_v18 = vpop.eup %2603 }
 0x459   :  { %v2606_v21 = vpop.eup %2605 }
 0x45a   :  { %v879_v22 = vadd.f32 1.0, %v2606_v21  ;;  %v2608_v23 = vpop.eup %2607 }
 0x45b   :  { %v878_v24 = vadd.f32 1.0, %v2608_v23 }
 0x45c   :  { %890 = vrot.lane.b32.xlu0 %v2604_v18, %s2975_s4  ;;  %2609 = vrcp.f32 %v879_v22 }
 0x45d   :  { %2611 = vrcp.f32 %v878_v24 }
 0x466   :  { %v2610_v25 = vpop.eup %2609 }
 0x467   :  { %v2612_v28 = vpop.eup %2611  ;;  %v887_v31 = vmul.f32 0.0, %v2610_v25 }
 0x468   :  { %v886_v34 = vmul.f32 0.0, %v2612_v28 }
 0x4ca   :  { %v893_v26 = vpop.permute.xlu0 %892 }
 0x4cb   :  { %v897_v27 = vmul.f32 %v2610_v25, %v893_v26 }
 0x4cd   :  { %902 = vrot.lane.b32.xlu1 %v897_v27, %s2976_s17 }
 0x4ce   :  { %v891_v29 = vpop.permute.xlu0 %890 }
 0x4cf   :  { %v896_v30 = vmul.f32 %v2612_v28, %v891_v29 }
 0x4d1   :  { %900 = vrot.lane.b32.xlu1 %v896_v30, %s2976_s17 }
 0x53f   :  { %v903_v32 = vpop.permute.xlu1 %902 }
 0x540   :  { %v907_v33 = vadd.f32 %v903_v32, %v887_v31 }
 0x542   :  { %2613 = vtanh.f32 %v907_v33  ;;  %v1022_v6 = vrot.slane %v907_v33, 7 }
 0x543   :  { %v901_v35 = vpop.permute.xlu1 %900 }
 0x544   :  { %v906_v36 = vadd.f32 %v901_v35, %v886_v34 }
 0x546   :  { %2615 = vtanh.f32 %v906_v36  ;;  %v1021_v9 = vrot.slane %v906_v36, 7 }
 0x54c   :  { %v2614_v37 = vpop.eup %2613 }
 0x54d   :  { %914 = vrot.lane.b32.xlu0 %v2614_v37, %s2975_s4 }
 0x550   :  { %v2616_v38 = vpop.eup %2615 }
 0x551   :  { %912 = vrot.lane.b32.xlu1 %v2616_v38, %s2975_s4 }
 0x5bf   :  { %v915_v39 = vpop.permute.xlu0 %914 }
 0x5c0   :  { %v919_v40 = vmul.f32 %v2610_v25, %v915_v39 }
 0x5c2   :  { %v922_v42 = vrot.slane %v919_v40, 7 }
 0x5c3   :  { %v913_v41 = vpop.permute.xlu1 %912 }
 0x5c4   :  { %v918_v43 = vmul.f32 %v2612_v28, %v913_v41 }
 0x5c6   :  { %v924_v44 = vsel %vm923_vm3, %v922_v42, %v918_v43 }
 0x5c7   :  { %925 = vrot.lane.b32.xlu0 %v924_v44, %s2976_s17 }
 0x639   :  { %v926_v45 = vpop.permute.xlu0 %925 }
 0x63a   :  { %2404 = vmatmul.mubr.msk.f32.vlgmr.msra.gmra.mrb[8].mxu0 %vm288_vm2, %v926_v45 }
 0x63b   :  { %2547 = vmatpush3.bf16.msra.mxu0 %v3328_v56  ;;  %2425 = vmatprep.mubr.msk.f32.mxu0 %vm2973_vm0, %v2974_v1 }
 0x63c   :  { %2548 = vmatprep.subr.bf16.mxu0 %v2972_v0 }
 0x63f   :  { %2550 = vmatpush3.bf16.msra.mxu0 %v3341_v59 }
 0x640   :  { %2557 = vmatprep.subr.bf16.mxu0 %v2972_v0 }
 0x70d   :  { %v995_v46 = vpop.f32.mrb[8].mxu0 }
 0x70e   :  { %v1000_v47 = vrot.slane %v995_v46, 7  ;;  %v1004_v48 = vadd.f32 %v995_v46, %v3366_v10  ;;  %v2405_v49 = vpop.f32.mrb[9].mxu0 }
 0x710   :  { %v1003_v50 = vadd.f32 %v1000_v47, %v3368_v14  ;;  %2617 = vtanh.f32 %v1004_v48  ;;  %v2214_v53 = vmul.f32 -1.442695, %v1004_v48 }
 0x712   :  { %2619 = vtanh.f32 %v1003_v50  ;;  %v2213_v54 = vmul.f32 -1.442695, %v1003_v50 }
 0x713   :  { %2621 = vpow2.f32 %v2214_v53 }
 0x714   :  { %2623 = vpow2.f32 %v2213_v54 }
 0x71a   :  { %v2618_v51 = vpop.eup %2617 }
 0x71b   :  { %1031 = vrot.lane.b32.xlu0 %v2618_v51, %s2975_s4 }
 0x71c   :  { %v2620_v52 = vpop.eup %2619 }
 0x71d   :  { %1029 = vrot.lane.b32.xlu1 %v2620_v52, %s2975_s4  ;;  %v2622_v55 = vpop.eup %2621 }
 0x71e   :  { %v2624_v57 = vpop.eup %2623  ;;  %v1012_v58 = vadd.f32 1.0, %v2622_v55 }
 0x71f   :  { %v1011_v61 = vadd.f32 1.0, %v2624_v57 }
 0x720   :  { %2625 = vrcp.f32 %v1012_v58 }
 0x721   :  { %2627 = vrcp.f32 %v1011_v61 }
 0x72a   :  { %v2626_v62 = vpop.eup %2625 }
 0x72b   :  { %v2628_v3 = vpop.eup %2627  ;;  %v1026_v8 = vmul.f32 %v2626_v62, %v1022_v6 }
 0x72c   :  { %v1025_v13 = vmul.f32 %v2628_v3, %v1021_v9 }
 0x78d   :  { %v1032_v63 = vpop.permute.xlu0 %1031 }
 0x78e   :  { %v1036_v2 = vmul.f32 %v2626_v62, %v1032_v63 }
 0x78f   :  { %v1030_v4 = vpop.permute.xlu1 %1029 }
 0x790   :  { %1041 = vrot.lane.b32.xlu0 %v1036_v2, %s2976_s17  ;;  %v1035_v5 = vmul.f32 %v2628_v3, %v1030_v4 }
 0x792   :  { %1039 = vrot.lane.b32.xlu1 %v1035_v5, %s2976_s17 }
 0x802   :  { %v1042_v11 = vpop.permute.xlu0 %1041 }
 0x803   :  { %v1046_v12 = vadd.f32 %v1042_v11, %v1026_v8 }
 0x804   :  { %v1040_v15 = vpop.permute.xlu1 %1039 }
 0x805   :  { %2629 = vtanh.f32 %v1046_v12  ;;  %v1045_v16 = vadd.f32 %v1040_v15, %v1025_v13  ;;  %v1161_v47 = vrot.slane %v1046_v12, 7 }
 0x807   :  { %2631 = vtanh.f32 %v1045_v16  ;;  %v1160_v46 = vrot.slane %v1045_v16, 7 }
 0x80f   :  { %v2630_v17 = vpop.eup %2629 }
 0x810   :  { %1053 = vrot.lane.b32.xlu0 %v2630_v17, %s2975_s4 }
 0x811   :  { %v2632_v18 = vpop.eup %2631 }
 0x812   :  { %1051 = vrot.lane.b32.xlu1 %v2632_v18, %s2975_s4 }
 0x882   :  { %v1054_v19 = vpop.permute.xlu0 %1053 }
 0x883   :  { %v1058_v22 = vmul.f32 %v2626_v62, %v1054_v19 }
 0x884   :  { %v1052_v20 = vpop.permute.xlu1 %1051 }
 0x885   :  { %v1057_v21 = vmul.f32 %v2628_v3, %v1052_v20 }
 0x887   :  { %v1061_v23 = vrot.slane %v1057_v21, 1 }
 0x889   :  { %v1062_v24 = vsel %vm923_vm3, %v1058_v22, %v1061_v23 }
 0x88a   :  { %1063 = vrot.lane.b32.xlu1 %v1062_v24, %s2976_s17 }
 0x8fc   :  { %v1064_v25 = vpop.permute.xlu1 %1063 }
 0x8fd   :  { %2415 = vmatmul.mubr.msk.f32.vlgmr.msra.gmra.mrb[8].mxu1 %vm288_vm2, %v1064_v25 }
 0x8fe   :  { %2553 = vmatpush3.bf16.msra.mxu1 %v3328_v56  ;;  %2436 = vmatprep.mubr.msk.f32.mxu1 %vm2973_vm0, %v2974_v1 }
 0x8ff   :  { %2554 = vmatprep.subr.bf16.mxu1 %v2972_v0 }
 0x902   :  { %2556 = vmatpush3.bf16.msra.mxu1 %v3341_v59 }
 0x903   :  { %2563 = vmatprep.subr.bf16.mxu1 %v2972_v0 }
 0x9d0   :  { %v1133_v26 = vpop.f32.mrb[8].mxu1 }
 0x9d1   :  { %v1138_v27 = vrot.slane %v1133_v26, 6  ;;  %v1139_v28 = vrot.slane %v1133_v26, 7  ;;  %v2416_v29 = vpop.f32.mrb[9].mxu1 }
 0x9d3   :  { %v1142_v30 = vadd.f32 %v1138_v27, %v3368_v14  ;;  %v1143_v31 = vadd.f32 %v1139_v28, %v3366_v10 }
 0x9d5   :  { %2633 = vtanh.f32 %v1142_v30  ;;  %v2216_v34 = vmul.f32 -1.442695, %v1142_v30  ;;  %v2217_v35 = vmul.f32 -1.442695, %v1143_v31 }
 0x9d6   :  { %2635 = vtanh.f32 %v1143_v31 }
 0x9d7   :  { %2637 = vpow2.f32 %v2216_v34 }
 0x9d8   :  { %2639 = vpow2.f32 %v2217_v35 }
 0x9df   :  { %v2634_v32 = vpop.eup %2633 }
 0x9e0   :  { %v2636_v33 = vpop.eup %2635  ;;  %1168 = vrot.lane.b32.xlu0 %v2634_v32, %s2975_s4 }
 0x9e1   :  { %1170 = vrot.lane.b32.xlu1 %v2636_v33, %s2975_s4  ;;  %v2638_v36 = vpop.eup %2637 }
 0x9e2   :  { %v2640_v37 = vpop.eup %2639  ;;  %v1150_v38 = vadd.f32 1.0, %v2638_v36 }
 0x9e3   :  { %v1151_v39 = vadd.f32 1.0, %v2640_v37 }
 0x9e4   :  { %2641 = vrcp.f32 %v1150_v38 }
 0x9e5   :  { %2643 = vrcp.f32 %v1151_v39 }
 0x9ee   :  { %v2642_v40 = vpop.eup %2641 }
 0x9ef   :  { %v2644_v42 = vpop.eup %2643  ;;  %v1164_v48 = vmul.f32 %v2642_v40, %v1160_v46 }
 0x9f0   :  { %v1165_v49 = vmul.f32 %v2644_v42, %v1161_v47 }
 0xa52   :  { %v1169_v41 = vpop.permute.xlu0 %1168 }
 0xa53   :  { %v1171_v43 = vpop.permute.xlu1 %1170  ;;  %v1174_v44 = vmul.f32 %v2642_v40, %v1169_v41 }
 0xa54   :  { %v1175_v45 = vmul.f32 %v2644_v42, %v1171_v43 }
 0xa55   :  { %1178 = vrot.lane.b32.xlu0 %v1174_v44, %s2976_s17 }
 0xa56   :  { %1180 = vrot.lane.b32.xlu1 %v1175_v45, %s2976_s17 }
 0xac7   :  { %v1179_v50 = vpop.permute.xlu0 %1178 }
 0xac8   :  { %v1181_v51 = vpop.permute.xlu1 %1180  ;;  %v1184_v52 = vadd.f32 %v1179_v50, %v1164_v48 }
 0xac9   :  { %v1185_v53 = vadd.f32 %v1181_v51, %v1165_v49 }
 0xaca   :  { %2645 = vtanh.f32 %v1184_v52  ;;  %v1300_v28 = vrot.slane %v1184_v52, 7 }
 0xacb   :  { %2647 = vtanh.f32 %v1185_v53  ;;  %v1301_v29 = vrot.slane %v1185_v53, 7 }
 0xad4   :  { %v2646_v54 = vpop.eup %2645 }
 0xad5   :  { %v2648_v55 = vpop.eup %2647  ;;  %1190 = vrot.lane.b32.xlu0 %v2646_v54, %s2975_s4 }
 0xad6   :  { %1192 = vrot.lane.b32.xlu1 %v2648_v55, %s2975_s4 }
 0xb47   :  { %v1191_v57 = vpop.permute.xlu0 %1190 }
 0xb48   :  { %v1193_v58 = vpop.permute.xlu1 %1192  ;;  %v1196_v61 = vmul.f32 %v2642_v40, %v1191_v57 }
 0xb49   :  { %v1197_v62 = vmul.f32 %v2644_v42, %v1193_v58 }
 0xb4a   :  { %v1200_v63 = vrot.slane %v1196_v61, 2 }
 0xb4b   :  { %v1201_v2 = vrot.slane %v1197_v62, 1 }
 0xb4d   :  { %v1202_v3 = vsel %vm923_vm3, %v1201_v2, %v1200_v63 }
 0xb4e   :  { %1203 = vrot.lane.b32.xlu0 %v1202_v3, %s2976_s17 }
 0xbc0   :  { %v1204_v4 = vpop.permute.xlu0 %1203 }
 0xbc1   :  { %2426 = vmatmul.mubr.msk.f32.vlgmr.msra.gmra.mrb[10].mxu0 %vm288_vm2, %v1204_v4 }
 0xbc2   :  { %2559 = vmatpush3.bf16.msra.mxu0 %v3328_v56  ;;  %2447 = vmatprep.mubr.msk.f32.mxu0 %vm2973_vm0, %v2974_v1 }
 0xbc3   :  { %2560 = vmatprep.subr.bf16.mxu0 %v2972_v0 }
 0xbc6   :  { %2562 = vmatpush3.bf16.msra.mxu0 %v3341_v59 }
 0xbc7   :  { %2569 = vmatprep.subr.bf16.mxu0 %v2972_v0 }
 0xc94   :  { %v1273_v5 = vpop.f32.mrb[10].mxu0 }
 0xc95   :  { %v1278_v6 = vrot.slane %v1273_v5, 5  ;;  %v1279_v8 = vrot.slane %v1273_v5, 6  ;;  %v2427_v9 = vpop.f32.mrb[11].mxu0 }
 0xc97   :  { %v1282_v11 = vadd.f32 %v1278_v6, %v3368_v14  ;;  %v1283_v12 = vadd.f32 %v1279_v8, %v3366_v10 }
 0xc99   :  { %2649 = vtanh.f32 %v1282_v11  ;;  %v2219_v16 = vmul.f32 -1.442695, %v1282_v11  ;;  %v2220_v17 = vmul.f32 -1.442695, %v1283_v12 }
 0xc9a   :  { %2651 = vtanh.f32 %v1283_v12 }
 0xc9b   :  { %2653 = vpow2.f32 %v2219_v16 }
 0xc9c   :  { %2655 = vpow2.f32 %v2220_v17 }
 0xca3   :  { %v2650_v13 = vpop.eup %2649 }
 0xca4   :  { %v2652_v15 = vpop.eup %2651  ;;  %1308 = vrot.lane.b32.xlu1 %v2650_v13, %s2975_s4 }
 0xca5   :  { %1310 = vrot.lane.b32.xlu0 %v2652_v15, %s2975_s4  ;;  %v2654_v18 = vpop.eup %2653 }
 0xca6   :  { %v2656_v19 = vpop.eup %2655  ;;  %v1290_v20 = vadd.f32 1.0, %v2654_v18 }
 0xca7   :  { %v1291_v21 = vadd.f32 1.0, %v2656_v19 }
 0xca8   :  { %2657 = vrcp.f32 %v1290_v20 }
 0xca9   :  { %2659 = vrcp.f32 %v1291_v21 }
 0xcb2   :  { %v2658_v22 = vpop.eup %2657 }
 0xcb3   :  { %v2660_v24 = vpop.eup %2659  ;;  %v1304_v30 = vmul.f32 %v2658_v22, %v1300_v28 }
 0xcb4   :  { %v1305_v31 = vmul.f32 %v2660_v24, %v1301_v29 }
 0xd16   :  { %v1309_v23 = vpop.permute.xlu1 %1308 }
 0xd17   :  { %v1311_v25 = vpop.permute.xlu0 %1310  ;;  %v1314_v26 = vmul.f32 %v2658_v22, %v1309_v23 }
 0xd18   :  { %v1315_v27 = vmul.f32 %v2660_v24, %v1311_v25 }
 0xd19   :  { %1318 = vrot.lane.b32.xlu1 %v1314_v26, %s2976_s17 }
 0xd1a   :  { %1320 = vrot.lane.b32.xlu0 %v1315_v27, %s2976_s17 }
 0xd8b   :  { %v1319_v32 = vpop.permute.xlu1 %1318 }
 0xd8c   :  { %v1321_v33 = vpop.permute.xlu0 %1320  ;;  %v1324_v34 = vadd.f32 %v1319_v32, %v1304_v30 }
 0xd8d   :  { %v1325_v35 = vadd.f32 %v1321_v33, %v1305_v31 }
 0xd8e   :  { %2661 = vtanh.f32 %v1324_v34  ;;  %v1440_v8 = vrot.slane %v1324_v34, 7 }
 0xd8f   :  { %2663 = vtanh.f32 %v1325_v35  ;;  %v1441_v9 = vrot.slane %v1325_v35, 7 }
 0xd98   :  { %v2662_v36 = vpop.eup %2661 }
 0xd99   :  { %v2664_v37 = vpop.eup %2663  ;;  %1330 = vrot.lane.b32.xlu1 %v2662_v36, %s2975_s4 }
 0xd9a   :  { %1332 = vrot.lane.b32.xlu0 %v2664_v37, %s2975_s4 }
 0xe0b   :  { %v1331_v38 = vpop.permute.xlu1 %1330 }
 0xe0c   :  { %v1333_v39 = vpop.permute.xlu0 %1332  ;;  %v1336_v40 = vmul.f32 %v2658_v22, %v1331_v38 }
 0xe0d   :  { %v1337_v41 = vmul.f32 %v2660_v24, %v1333_v39 }
 0xe0e   :  { %v1340_v42 = vrot.slane %v1336_v40, 3 }
 0xe0f   :  { %v1341_v43 = vrot.slane %v1337_v41, 2 }
 0xe11   :  { %v1342_v44 = vsel %vm923_vm3, %v1341_v43, %v1340_v42 }
 0xe12   :  { %1343 = vrot.lane.b32.xlu1 %v1342_v44, %s2976_s17 }
 0xe84   :  { %v1344_v45 = vpop.permute.xlu1 %1343 }
 0xe85   :  { %2437 = vmatmul.mubr.msk.f32.vlgmr.msra.gmra.mrb[10].mxu1 %vm288_vm2, %v1344_v45 }
 0xe86   :  { %2565 = vmatpush3.bf16.msra.mxu1 %v3328_v56  ;;  %2458 = vmatprep.mubr.msk.f32.mxu1 %vm2973_vm0, %v2974_v1 }
 0xe87   :  { %2566 = vmatprep.subr.bf16.mxu1 %v2972_v0 }
 0xe8a   :  { %2568 = vmatpush3.bf16.msra.mxu1 %v3341_v59 }
 0xe8b   :  { %2472 = vmatprep.subr.mxu1 %v2974_v1 }
 0xf58   :  { %v1413_v46 = vpop.f32.mrb[10].mxu1 }
 0xf59   :  { %v1418_v47 = vrot.slane %v1413_v46, 4  ;;  %v1419_v48 = vrot.slane %v1413_v46, 5  ;;  %v2438_v49 = vpop.f32.mrb[11].mxu1 }
 0xf5b   :  { %v1422_v50 = vadd.f32 %v1418_v47, %v3368_v14  ;;  %v1423_v51 = vadd.f32 %v1419_v48, %v3366_v10 }
 0xf5d   :  { %2665 = vtanh.f32 %v1422_v50  ;;  %v2222_v54 = vmul.f32 -1.442695, %v1422_v50  ;;  %v2223_v55 = vmul.f32 -1.442695, %v1423_v51 }
 0xf5e   :  { %2667 = vtanh.f32 %v1423_v51 }
 0xf5f   :  { %2669 = vpow2.f32 %v2222_v54 }
 0xf60   :  { %2671 = vpow2.f32 %v2223_v55 }
 0xf67   :  { %v2666_v52 = vpop.eup %2665 }
 0xf68   :  { %v2668_v53 = vpop.eup %2667  ;;  %1448 = vrot.lane.b32.xlu0 %v2666_v52, %s2975_s4 }
 0xf69   :  { %1450 = vrot.lane.b32.xlu1 %v2668_v53, %s2975_s4  ;;  %v2670_v57 = vpop.eup %2669 }
 0xf6a   :  { %v2672_v58 = vpop.eup %2671  ;;  %v1430_v61 = vadd.f32 1.0, %v2670_v57 }
 0xf6b   :  { %v1431_v62 = vadd.f32 1.0, %v2672_v58 }
 0xf6c   :  { %2673 = vrcp.f32 %v1430_v61 }
 0xf6d   :  { %2675 = vrcp.f32 %v1431_v62 }
 0xf76   :  { %v2674_v63 = vpop.eup %2673 }
 0xf77   :  { %v2676_v3 = vpop.eup %2675  ;;  %v1444_v11 = vmul.f32 %v2674_v63, %v1440_v8 }
 0xf78   :  { %v1445_v12 = vmul.f32 %v2676_v3, %v1441_v9 }
 0xfda   :  { %v1449_v2 = vpop.permute.xlu0 %1448 }
 0xfdb   :  { %v1451_v4 = vpop.permute.xlu1 %1450  ;;  %v1454_v5 = vmul.f32 %v2674_v63, %v1449_v2 }
 0xfdc   :  { %v1455_v6 = vmul.f32 %v2676_v3, %v1451_v4  ;;  %v2199_v4 = vld [vmem:[#allocation11] ss:$0 sm:$0xff] }
 0xfdd   :  { %1458 = vrot.lane.b32.xlu0 %v1454_v5, %s2976_s17  ;;  %v439_v5 = vadd.f32 %v2199_v4, %v3345_v60 }
 0xfde   :  { %1460 = vrot.lane.b32.xlu1 %v1455_v6, %s2976_s17  ;;  %v1898_v6 = vld [vmem:[%s3579_s18] sm:$0xff] }
 0xfdf   :  { %v442_v9 = vmax.f32 %v439_v5, 0.0 }
0x104f   :  { %v1459_v13 = vpop.permute.xlu0 %1458 }
0x1050   :  { %v1461_v15 = vpop.permute.xlu1 %1460  ;;  %v1464_v16 = vadd.f32 %v1459_v13, %v1444_v11 }
0x1051   :  { %v1465_v17 = vadd.f32 %v1461_v15, %v1445_v12 }
0x1052   :  { %2677 = vtanh.f32 %v1464_v16  ;;  %v1580_v46 = vrot.slane %v1464_v16, 7 }
0x1053   :  { %2679 = vtanh.f32 %v1465_v17  ;;  %v1581_v47 = vrot.slane %v1465_v17, 7 }
0x105c   :  { %v2678_v18 = vpop.eup %2677 }
0x105d   :  { %v2680_v19 = vpop.eup %2679  ;;  %1470 = vrot.lane.b32.xlu0 %v2678_v18, %s2975_s4 }
0x105e   :  { %1472 = vrot.lane.b32.xlu1 %v2680_v19, %s2975_s4 }
0x10cf   :  { %v1471_v20 = vpop.permute.xlu0 %1470 }
0x10d0   :  { %v1473_v21 = vpop.permute.xlu1 %1472  ;;  %v1476_v22 = vmul.f32 %v2674_v63, %v1471_v20 }
0x10d1   :  { %v1477_v23 = vmul.f32 %v2676_v3, %v1473_v21 }
0x10d2   :  { %v1480_v24 = vrot.slane %v1476_v22, 4 }
0x10d3   :  { %v1481_v25 = vrot.slane %v1477_v23, 3 }
0x10d5   :  { %v1482_v26 = vsel %vm923_vm3, %v1481_v25, %v1480_v24 }
0x10d6   :  { %1483 = vrot.lane.b32.xlu0 %v1482_v26, %s2976_s17 }
0x1148   :  { %v1484_v27 = vpop.permute.xlu0 %1483 }
0x1149   :  { %2448 = vmatmul.mubr.msk.f32.vlgmr.msra.gmra.mrb[12].mxu0 %vm288_vm2, %v1484_v27 }
0x114a   :  { %2571 = vmatpush3.bf16.msra.mxu0 %v3328_v56  ;;  %2469 = vmatprep.mubr.msk.f32.mxu0 %vm2973_vm0, %v2974_v1 }
0x114b   :  { %2572 = vmatprep.subr.bf16.mxu0 %v2972_v0 }
0x114e   :  { %2574 = vmatpush3.bf16.msra.mxu0 %v3341_v59 }
0x114f   :  { %2477 = vmatprep.subr.mxu0 %v2974_v1 }
0x121c   :  { %v1553_v28 = vpop.f32.mrb[12].mxu0 }
0x121d   :  { %v1558_v29 = vrot.slane %v1553_v28, 3  ;;  %v1559_v30 = vrot.slane %v1553_v28, 4  ;;  %v2449_v31 = vpop.f32.mrb[13].mxu0 }
0x121f   :  { %v1562_v32 = vadd.f32 %v1558_v29, %v3368_v14  ;;  %v1563_v33 = vadd.f32 %v1559_v30, %v3366_v10 }
0x1221   :  { %2681 = vtanh.f32 %v1562_v32  ;;  %v2225_v35 = vmul.f32 -1.442695, %v1562_v32  ;;  %v2226_v59 = vmul.f32 -1.442695, %v1563_v33 }
0x1222   :  { %2683 = vtanh.f32 %v1563_v33 }
0x1223   :  { %2685 = vpow2.f32 %v2225_v35 }
0x1224   :  { %2687 = vpow2.f32 %v2226_v59 }
0x122b   :  { %v2682_v56 = vpop.eup %2681 }
0x122c   :  { %v2684_v34 = vpop.eup %2683  ;;  %1588 = vrot.lane.b32.xlu1 %v2682_v56, %s2975_s4 }
0x122d   :  { %1590 = vrot.lane.b32.xlu0 %v2684_v34, %s2975_s4  ;;  %v2686_v36 = vpop.eup %2685 }
0x122e   :  { %v2688_v37 = vpop.eup %2687  ;;  %v1570_v38 = vadd.f32 1.0, %v2686_v36 }
0x122f   :  { %v1571_v39 = vadd.f32 1.0, %v2688_v37 }
0x1230   :  { %2689 = vrcp.f32 %v1570_v38 }
0x1231   :  { %2691 = vrcp.f32 %v1571_v39 }
0x123a   :  { %v2690_v40 = vpop.eup %2689 }
0x123b   :  { %v2692_v42 = vpop.eup %2691  ;;  %v1584_v48 = vmul.f32 %v2690_v40, %v1580_v46 }
0x123c   :  { %v1585_v49 = vmul.f32 %v2692_v42, %v1581_v47 }
0x129e   :  { %v1589_v41 = vpop.permute.xlu1 %1588 }
0x129f   :  { %v1591_v43 = vpop.permute.xlu0 %1590  ;;  %v1594_v44 = vmul.f32 %v2690_v40, %v1589_v41 }
0x12a0   :  { %v1595_v45 = vmul.f32 %v2692_v42, %v1591_v43 }
0x12a1   :  { %1598 = vrot.lane.b32.xlu1 %v1594_v44, %s2976_s17 }
0x12a2   :  { %1600 = vrot.lane.b32.xlu0 %v1595_v45, %s2976_s17 }
0x1313   :  { %v1599_v50 = vpop.permute.xlu1 %1598 }
0x1314   :  { %v1601_v51 = vpop.permute.xlu0 %1600  ;;  %v3461_v52 = vadd.f32 %v1599_v50, %v1584_v48  ;;  %v2205_v48 = vld [vmem:[#allocation16] ss:$0 sm:$0xff]  ;;  %v1980_v50 = vld [vmem:[%s3581_s20] sm:$0xff] }
0x1315   :  { %v3463_v53 = vadd.f32 %v1601_v51, %v1585_v49  ;;  %v693_v49 = vadd.f32 %v2205_v48, %v3361_v7  ;;  %v2233_v7 = vld [vmem:[%s3580_s19] ss:$0 sm:$0xff] }
0x1316   :  { %2693 = vtanh.f32 %v3461_v52  ;;  %v1720_v33 = vrot.slane %v3461_v52, 7 }
0x1317   :  { %2695 = vtanh.f32 %v3463_v53  ;;  %v1721_v56 = vrot.slane %v3463_v53, 7  ;;  %v696_v52 = vmax.f32 %v693_v49, 0.0  ;;  %v2239_v49 = vld [vmem:[%s3620_s30] ss:$0 sm:$0xff] }
0x1320   :  { %v2694_v54 = vpop.eup %2693 }
0x1321   :  { %v2696_v55 = vpop.eup %2695  ;;  %1610 = vrot.lane.b32.xlu1 %v2694_v54, %s2975_s4 }
0x1322   :  { %1612 = vrot.lane.b32.xlu0 %v2696_v55, %s2975_s4 }
0x1393   :  { %v1611_v57 = vpop.permute.xlu1 %1610 }
0x1394   :  { %v1613_v58 = vpop.permute.xlu0 %1612  ;;  %v1616_v61 = vmul.f32 %v2690_v40, %v1611_v57 }
0x1395   :  { %v1617_v62 = vmul.f32 %v2692_v42, %v1613_v58  ;;  %v2235_v58 = vld [vmem:[%s3582_s21] ss:$0 sm:$0xff] }
0x1396   :  { %v1620_v63 = vrot.slane %v1616_v61, 5 }
0x1397   :  { %v1621_v2 = vrot.slane %v1617_v62, 4 }
0x1399   :  { %v1622_v3 = vsel %vm923_vm3, %v1621_v2, %v1620_v63 }
0x139a   :  { %1623 = vrot.lane.b32.xlu1 %v1622_v3, %s2976_s17 }
0x140c   :  { %v1624_v8 = vpop.permute.xlu1 %1623 }
0x140d   :  { %2459 = vmatmul.mubr.msk.f32.vlgmr.msra.gmra.mrb[12].mxu1 %vm288_vm2, %v1624_v8 }
0x140e   :  { %2473 = vmatpush3.msra.mxu1 %v1898_v6  ;;  %2474 = vmatprep.mubr.msk.f32.mxu1 %vm2973_vm0, %v2974_v1 }
0x140f   :  { %2575 = vmatprep.subr.bf16.mxu1 %v2972_v0 }
0x1411   :  { %2475 = vmatmul.mubr.msk.f32.vlgmr.msra.gmra.mrb[14].mxu1 %vm1906_vm4, %v442_v9 }
0x1412   :  { %2490 = vmatprep.mubr.msk.f32.mxu1 %vm2973_vm0, %v2974_v1 }
0x14e0   :  { %v1693_v60 = vpop.f32.mrb[12].mxu1 }
0x14e1   :  { %v1698_v11 = vrot.slane %v1693_v60, 2  ;;  %v1699_v12 = vrot.slane %v1693_v60, 3  ;;  %v2460_v13 = vpop.f32.mrb[13].mxu1 }
0x14e3   :  { %v1702_v15 = vadd.f32 %v1698_v11, %v3368_v14  ;;  %v1703_v16 = vadd.f32 %v1699_v12, %v3366_v10 }
0x14e4   :  { %v3484_v17 = vpop.f32.mrb[14].mxu1 }
0x14e5   :  { %2697 = vtanh.f32 %v1702_v15  ;;  %v2476_v18 = vpop.f32.mrb[15].mxu1  ;;  %v2228_v21 = vmul.f32 -1.442695, %v1702_v15  ;;  %v2229_v22 = vmul.f32 -1.442695, %v1703_v16  ;;  %v1977_v63 = vadd.f32 %v2233_v7, %v3484_v17 }
0x14e6   :  { %2699 = vtanh.f32 %v1703_v16 }
0x14e7   :  { %2701 = vpow2.f32 %v2228_v21 }
0x14e8   :  { %2703 = vpow2.f32 %v2229_v22 }
0x14ef   :  { %v2698_v19 = vpop.eup %2697 }
0x14f0   :  { %v2700_v20 = vpop.eup %2699  ;;  %1728 = vrot.lane.b32.xlu0 %v2698_v19, %s2975_s4 }
0x14f1   :  { %1730 = vrot.lane.b32.xlu1 %v2700_v20, %s2975_s4  ;;  %v2702_v23 = vpop.eup %2701 }
0x14f2   :  { %v2704_v24 = vpop.eup %2703  ;;  %v1710_v25 = vadd.f32 1.0, %v2702_v23 }
0x14f3   :  { %v1711_v26 = vadd.f32 1.0, %v2704_v24 }
0x14f4   :  { %2705 = vrcp.f32 %v1710_v25 }
0x14f5   :  { %2707 = vrcp.f32 %v1711_v26 }
0x14fe   :  { %v2706_v27 = vpop.eup %2705 }
0x14ff   :  { %v2708_v29 = vpop.eup %2707  ;;  %v1724_v34 = vmul.f32 %v2706_v27, %v1720_v33 }
0x1500   :  { %v1725_v35 = vmul.f32 %v2708_v29, %v1721_v56 }
0x1562   :  { %v1729_v28 = vpop.permute.xlu0 %1728 }
0x1563   :  { %v1731_v30 = vpop.permute.xlu1 %1730  ;;  %v1734_v31 = vmul.f32 %v2706_v27, %v1729_v28  ;;  %v2062_v28 = vld [vmem:[%s3583_s22 + $0x8] sm:$0xff] }
0x1564   :  { %v1735_v32 = vmul.f32 %v2708_v29, %v1731_v30 }
0x1565   :  { %1738 = vrot.lane.b32.xlu0 %v1734_v31, %s2976_s17  ;;  %v2064_v31 = vld [vmem:[%s3583_s22 + $0x18] sm:$0xff] }
0x1566   :  { %1740 = vrot.lane.b32.xlu1 %v1735_v32, %s2976_s17 }
0x15d7   :  { %v1739_v59 = vpop.permute.xlu0 %1738 }
0x15d8   :  { %v1741_v36 = vpop.permute.xlu1 %1740  ;;  %v3492_v37 = vadd.f32 %v1739_v59, %v1724_v34 }
0x15d9   :  { %v3494_v38 = vadd.f32 %v1741_v36, %v1725_v35 }
0x15da   :  { %2709 = vtanh.f32 %v3492_v37  ;;  %v1860_v19 = vrot.slane %v3492_v37, 7 }
0x15db   :  { %2711 = vtanh.f32 %v3494_v38  ;;  %v1861_v20 = vrot.slane %v3494_v38, 7 }
0x15e4   :  { %v2710_v39 = vpop.eup %2709 }
0x15e5   :  { %v2712_v40 = vpop.eup %2711  ;;  %1750 = vrot.lane.b32.xlu0 %v2710_v39, %s2975_s4 }
0x15e6   :  { %1752 = vrot.lane.b32.xlu1 %v2712_v40, %s2975_s4 }
0x1657   :  { %v1751_v41 = vpop.permute.xlu0 %1750 }
0x1658   :  { %v1753_v42 = vpop.permute.xlu1 %1752  ;;  %v1756_v43 = vmul.f32 %v2706_v27, %v1751_v41  ;;  %v2061_v27 = vld [vmem:[%s3583_s22] sm:$0xff] }
0x1659   :  { %v1757_v44 = vmul.f32 %v2708_v29, %v1753_v42  ;;  %v2063_v29 = vld [vmem:[%s3583_s22 + $0x10] sm:$0xff]  ;;  %v2576_v30 = vpack.c.bf16 %v2062_v28, %v2061_v27 }
0x165a   :  { %v1760_v45 = vrot.slane %v1756_v43, 6  ;;  %v2579_v32 = vpack.c.bf16 %v2064_v31, %v2063_v29 }
0x165b   :  { %v1761_v46 = vrot.slane %v1757_v44, 5  ;;  %2577 = vmatpush3.bf16.msra.mxu1 %v2576_v30 }
0x165c   :  { %2578 = vmatprep.subr.bf16.mxu1 %v2972_v0  ;;  %v2237_v0 = vld [vmem:[%s3584_s23] ss:$0 sm:$0xff]  ;;  %s2980_s23 = smov [#allocation17]  }
0x165d   :  { %v1762_v47 = vsel %vm923_vm3, %v1761_v46, %v1760_v45  ;;  %s2182_s7 = sshll.u32 %s2980_s23, 4  ;;  %s2183_s7 = int_to_ptr.vmem [resolvable:$true] %s2182_s7 }
0x165e   :  { %1763 = vrot.lane.b32.xlu0 %v1762_v47, %s2976_s17  ;;  %s2927_s29 = scalar_lea.vmem %s2183_s7, 32  ;;  %p2932_p3 = scmp.lt.s32.totalorder %s2183_s7, %s2183_s7 }
0x165f   :  { %2580 = vmatpush3.bf16.msra.mxu1 %v2579_v32  ;;  %p2928_p2 = scmp.ne.s32.totalorder %s2183_s7, %s2927_s29  ;;  %p2933_p4 = scmp.lt.s32.totalorder %s2927_s29, %s2927_s29 }
0x1661   :  { %p2934_p5 = por %p2933_p4, %p2932_p3 }
0x1663   :  { %p2935_p6 = pnand %p2934_p5, %p2928_p2 }
0x16d0   :  { %v1764_v51 = vpop.permute.xlu0 %1763 }
0x16d1   :  { %2470 = vmatmul.mubr.msk.f32.vlgmr.msra.gmra.mrb[14].mxu0 %vm288_vm2, %v1764_v51 }
0x16d2   :  { %2478 = vmatpush3.msra.mxu0 %v1980_v50  ;;  %2479 = vmatprep.mubr.msk.f32.mxu0 %vm2973_vm0, %v2974_v1 }
0x16d5   :  { %2480 = vmatmul.mubr.msk.f32.vlgmr.msra.gmra.mrb[16].mxu0 %vm1906_vm4, %v696_v52 }
0x17a4   :  { %v1833_v53 = vpop.f32.mrb[14].mxu0 }
0x17a5   :  { %v1838_v54 = vrot.slane %v1833_v53, 1  ;;  %v1839_v55 = vrot.slane %v1833_v53, 2  ;;  %v2471_v57 = vpop.f32.mrb[15].mxu0 }
0x17a7   :  { %v1842_v61 = vadd.f32 %v1838_v54, %v3368_v14  ;;  %v1843_v62 = vadd.f32 %v1839_v55, %v3366_v10 }
0x17a8   :  { %v2057_v1 = vpop.f32.mrb[16].mxu0 }
0x17a9   :  { %2713 = vtanh.f32 %v1842_v61  ;;  %v2058_v2 = vadd.f32 %v2235_v58, %v2057_v1  ;;  %v2481_v3 = vpop.f32.mrb[17].mxu0  ;;  %v2231_v8 = vmul.f32 -1.442695, %v1842_v61  ;;  %v2232_v9 = vmul.f32 -1.442695, %v1843_v62 }
0x17aa   :  { %2715 = vtanh.f32 %v1843_v62 }
0x17ab   :  { %v2151_v4 = vmul.f32 %v2058_v2, %v1977_v63  ;;  %2717 = vpow2.f32 %v2231_v8 }
0x17ac   :  { %2719 = vpow2.f32 %v2232_v9 }
0x17b3   :  { %v2714_v5 = vpop.eup %2713 }
0x17b4   :  { %v2716_v6 = vpop.eup %2715  ;;  %1868 = vrot.lane.b32.xlu1 %v2714_v5, %s2975_s4 }
0x17b5   :  { %1870 = vrot.lane.b32.xlu0 %v2716_v6, %s2975_s4  ;;  %v2718_v14 = vpop.eup %2717 }
0x17b6   :  { %v2720_v10 = vpop.eup %2719  ;;  %v1850_v60 = vadd.f32 1.0, %v2718_v14 }
0x17b7   :  { %v1851_v11 = vadd.f32 1.0, %v2720_v10 }
0x17b8   :  { %2721 = vrcp.f32 %v1850_v60 }
0x17b9   :  { %2723 = vrcp.f32 %v1851_v11 }
0x17c2   :  { %v2722_v12 = vpop.eup %2721 }
0x17c3   :  { %v2724_v15 = vpop.eup %2723  ;;  %v1864_v21 = vmul.f32 %v2722_v12, %v1860_v19 }
0x17c4   :  { %v1865_v22 = vmul.f32 %v2724_v15, %v1861_v20 }
0x1826   :  { %v1869_v13 = vpop.permute.xlu1 %1868 }
0x1827   :  { %v1871_v16 = vpop.permute.xlu0 %1870  ;;  %v1874_v17 = vmul.f32 %v2722_v12, %v1869_v13 }
0x1828   :  { %v1875_v18 = vmul.f32 %v2724_v15, %v1871_v16 }
0x1829   :  { %1878 = vrot.lane.b32.xlu1 %v1874_v17, %s2976_s17 }
0x182a   :  { %1880 = vrot.lane.b32.xlu0 %v1875_v18, %s2976_s17 }
0x189b   :  { %v1879_v23 = vpop.permute.xlu1 %1878 }
0x189c   :  { %v1881_v24 = vpop.permute.xlu0 %1880  ;;  %v1884_v25 = vadd.f32 %v1879_v23, %v1864_v21 }
0x189d   :  { %v1885_v26 = vadd.f32 %v1881_v24, %v1865_v22 }
0x189e   :  { %2725 = vtanh.f32 %v1884_v25 }
0x189f   :  { %2727 = vtanh.f32 %v1885_v26 }
0x18a8   :  { %v2726_v33 = vpop.eup %2725 }
0x18a9   :  { %v2728_v56 = vpop.eup %2727  ;;  %1890 = vrot.lane.b32.xlu1 %v2726_v33, %s2975_s4 }
0x18aa   :  { %1892 = vrot.lane.b32.xlu0 %v2728_v56, %s2975_s4 }
0x191b   :  { %v1891_v34 = vpop.permute.xlu1 %1890 }
0x191c   :  { %v1893_v35 = vpop.permute.xlu0 %1892  ;;  %v1896_v59 = vmul.f32 %v2722_v12, %v1891_v34 }
0x191d   :  { %v1897_v36 = vmul.f32 %v2724_v15, %v1893_v35 }
0x191e   :  { %v2074_v37 = vrot.slane %v1896_v59, 7 }
0x191f   :  { %v2075_v38 = vrot.slane %v1897_v36, 6 }
0x1921   :  { %v2076_v39 = vsel %vm923_vm3, %v2075_v38, %v2074_v37 }
0x1922   :  { %2077 = vrot.lane.b32.xlu1 %v2076_v39, %s2976_s17 }
0x1994   :  { %v2078_v40 = vpop.permute.xlu1 %2077 }
0x1995   :  { %2491 = vmatmul.mubr.msk.f32.vlgmr.msra.gmra.mrb[16].mxu1 %vm288_vm2, %v2078_v40 }
0x1a68   :  { %v2147_v41 = vpop.f32.mrb[16].mxu1 }
0x1a69   :  { %v2148_v42 = vadd.f32 %v2237_v0, %v2147_v41  ;;  %v2492_v43 = vpop.f32.mrb[17].mxu1 }
0x1a6b   :  { %v2152_v44 = vmul.f32 %v2151_v4, %v2148_v42 }
0x1a6d   :  { %2158 = vrot.lane.b32.xlu1 %v2152_v44, %s2977_s25  ;;  %2154 = vrot.lane.b32.xlu0 %v2152_v44, %s2978_s8 }
0x1a71   :  { %2162 = vrot.lane.b32.xlu0 %v2152_v44, %s2979_s1 }
0x1adf   :  { %v2155_v45 = vpop.permute.xlu0 %2154  ;;  %v2159_v47 = vpop.permute.xlu1 %2158 }
0x1ae0   :  { %v2157_v46 = vadd.f32 %v2155_v45, %v2152_v44 }
0x1ae2   :  { %v2161_v48 = vadd.f32 %v2159_v47, %v2157_v46 }
0x1ae3   :  { %v2163_v50 = vpop.permute.xlu0 %2162 }
0x1ae4   :  { %v2165_v51 = vadd.f32 %v2163_v50, %v2161_v48 }
0x1ae6   :  { %v2173_v52 = vadd.f32 %v2239_v49, %v2165_v51 }
0x1ae8   :  { %2175 = vst.msk [vmem:[#allocation17] sm:$0x3] %vm2174_vm5, %v2173_v52 }
0x1ae9   :  { %2938 = shalt.err (!%p2935_p6)
}
0x1aea   :  { %s3621_s4 = sld [smem:[#allocation35_spill]] }
0x1af0   :  { %s2939_s17 = scalar_lea.hbm %s3621_s4, 32 }
0x1af1   :  { %p2940_p7 = scmp.ne.s32.totalorder %s3621_s4, %s2939_s17  ;;  %p2943_p8 = scmp.lt.u32.totalorder %s2939_s17, %s3621_s4 }
0x1af3   :  { %p2945_p9 = pnand %p2943_p8, %p2940_p7 }
0x1af5   :  { %2948 = shalt.err (!%p2945_p9)
}
0x1af6   :  { %2185 = dma.vmem_to_hbm [thread:$0]  %s2183_s7, 32, %s3621_s4, [#allocation4]  }
0x1af7   :  { %2959 = dma.done.wait [#allocation4], 32  }
0x1af8   :  { %2960 = vsyncadd [#allocation4], 4294967264 }
0x1af9   :  { %2189 = vsyncpa [#allocation3], 1 }
0x1afa   :  { %2190 = vsyncpa [#allocation6], 1 }
0x1afb   :  { %2191 = vsyncpa [#allocation9], 1 }
0x1afc   :  { %2192 = vsyncpa [#allocation12], 1 }
0x1afd   :  { %2193 = vsyncpa [#allocation15], 1 }
0x1afe   :  { %2194 = vsyncpa [#allocation4], 1 }

</bundles_post_ra>
